<compile_context>
chip_gen: v7x
topology: tpu7x:2x2x1
jax: 0.10.0
libtpu: 0.0.40
codegen_flags: <defaults>
</compile_context>

<pallas_src>
import numpy as np

import jax
import jax.numpy as jnp
from jax.experimental import pallas as pl
from jax.experimental.pallas import tpu as pltpu


_BIAS_ROWS = 16                       # bias fold padded to a full bf16 sublane tile
_WR_TILE_BUDGET = 8 * 1024 * 1024     # bytes allowed for the double-buffered wr tile
_VMEM_LIMIT = 32 * 1024 * 1024        # explicit scoped-VMEM limit (safe on v5e/v6e/v7x)


def _fold_operators(w_hwio, bias, H, W, padding):
    """Constant operators folding 2x-nearest-upsample + zero-pad + conv taps.

    Returns (cw, wr_aug, Ho, Wo):
      cw     : (K, W, Wo)                       bf16  0/1 column gather per kw tap
      wr_aug : (Cout*Ho, K*Cin*H + _BIAS_ROWS)  f32   kh/row-folded weights + bias column
    """
    K, _, Cin, Cout = w_hwio.shape
    Ho = 2 * H + 2 * padding - K + 1
    Wo = 2 * W + 2 * padding - K + 1

    # cw[kw, w, wo] = 1 iff output column wo at tap kw reads ORIGINAL input column w,
    # i.e. w == (wo + kw - padding) // 2 and the upsampled index lies inside [0, 2W).
    kw_i = np.arange(K)[:, None]
    wo_i = np.arange(Wo)[None, :]
    src = wo_i + kw_i - padding
    valid = (src >= 0) & (src < 2 * W)
    src_w = np.clip(src // 2, 0, W - 1)
    cw = np.zeros((K, W, Wo), np.float32)
    kk, cc = np.nonzero(valid)
    cw[kk, src_w[kk, cc], cc] = 1.0

    # rh[kh, ho, h]: same 0/1 selection for rows.
    kh_i = np.arange(K)[:, None]
    ho_i = np.arange(Ho)[None, :]
    srcr = ho_i + kh_i - padding
    validr = (srcr >= 0) & (srcr < 2 * H)
    src_h = np.clip(srcr // 2, 0, H - 1)
    rh = np.zeros((K, Ho, H), np.float32)
    kk, rr = np.nonzero(validr)
    rh[kk, rr, src_h[kk, rr]] = 1.0

    # wr[(co,ho), (kw,ci,h)] = sum_kh w[kh,kw,ci,co] * rh[kh,ho,h]; column order (kw,ci,h)
    # matches the row order of the in-kernel patch scratch.
    wr = jnp.einsum('xyio,xuh->ouyih', w_hwio.astype(jnp.float32), jnp.asarray(rh))
    wr = wr.reshape(Cout * Ho, K * Cin * H)

    # Fold the bias: one bias column (matched by all-ones patch rows) plus zero columns up
    # to a full bf16 sublane tile so the in-kernel scratch write stays aligned.
    rows = Cout * Ho
    bias_col = jnp.repeat(bias.astype(jnp.float32), Ho).reshape(rows, 1)
    zeros = jnp.zeros((rows, _BIAS_ROWS - 1), jnp.float32)
    wr_aug = jnp.concatenate([wr, bias_col, zeros], axis=1)

    return jnp.asarray(cw, dtype=jnp.bfloat16), wr_aug, Ho, Wo


def _pick_lane_groups(rows, Wo):
    """Group g consecutive output rows into the lane axis until the store is >= 128 wide."""
    g = 1
    while g * Wo < 128 and rows % (2 * g * 8) == 0:
        g *= 2
    return g


def _pick_rows_per_step(rows, g, depth):
    """Largest divisor of `rows` that is a multiple of 8*g and keeps the double-buffered
    bf16 wr tile under _WR_TILE_BUDGET (fewest grid steps within the VMEM budget)."""
    step = 8 * g
    if rows % step != 0:
        return rows                                  # full-dim block (always legal)
    limit = max(step, _WR_TILE_BUDGET // (2 * depth * 2))   # 2 buffers x bf16 bytes
    best = step
    for cand in range(step, rows + 1, step):
        if rows % cand == 0 and cand <= limit:
            best = cand
    return best


def upscale_conv(img_nchw, w_hwio, bias, *, padding):
    """Forward of UpscaleConv: leaky_relu -> 2x nearest upsample -> conv2d (stride 1)."""
    B, Cin, H, W = img_nchw.shape
    K = w_hwio.shape[0]
    Cout = w_hwio.shape[-1]

    cw, wr_aug, Ho, Wo = _fold_operators(w_hwio, bias, H, W, padding)
    rows = Cout * Ho
    CinH = Cin * H
    D1 = wr_aug.shape[1]                              # K*Cin*H + _BIAS_ROWS

    g = _pick_lane_groups(rows, Wo)                   # lane grouping for dense stores
    rps = _pick_rows_per_step(rows, g, D1)            # output rows per grid step
    n_chunks = rows // rps
    rpg = rps // g

    # Interleave wr rows so sub-block i of a chunk holds output rows r2*g + i; the kernel's
    # lane-concatenated result then maps row-major exactly onto the NCHW-flat output.
    wr_k = wr_aug.reshape(n_chunks, rpg, g, D1).swapaxes(1, 2).reshape(rows, D1)
    wr_k = wr_k.astype(jnp.bfloat16)

    # Free row-major metadata reshape: NCHW rows flattened as ci*H + h.
    x2d = img_nchw.reshape(B, CinH, W)

    def kernel(x_ref, cw_ref, wr_ref, o_ref, patch_ref):
        # Stage 1 (invariant across output-row chunks): leaky_relu + per-kw column gather,
        # written straight into the persistent VMEM patch scratch (+ ones rows for bias).
        @pl.when(pl.program_id(1) == 0)
        def _fill_patch():
            a = x_ref[0]
            a = jnp.where(a >= 0, a, jnp.float32(0.01) * a).astype(jnp.bfloat16)
            for kw in range(K):
                col = jnp.dot(a, cw_ref[kw], preferred_element_type=jnp.float32)
                patch_ref[pl.ds(kw * CinH, CinH), :] = col.astype(jnp.bfloat16)
            patch_ref[pl.ds(K * CinH, _BIAS_ROWS), :] = jnp.ones(
                (_BIAS_ROWS, Wo), jnp.bfloat16)

        # Stage 2: g row-interleaved deep contractions (f32 accumulation); the lane concat
        # makes the stored tile >= 128 lanes wide (dense vst + fat writeback DMA).
        patch = patch_ref[...]
        parts = [
            jnp.dot(wr_ref[pl.ds(i * rpg, rpg), :], patch,
                    preferred_element_type=jnp.float32)
            for i in range(g)
        ]
        y = parts[0] if g == 1 else jnp.concatenate(parts, axis=-1)
        o_ref[0] = y.astype(o_ref.dtype)

    out2d = pl.pallas_call(
        kernel,
        out_shape=jax.ShapeDtypeStruct((B, rows // g, g * Wo), img_nchw.dtype),
        grid=(B, n_chunks),
        in_specs=[
            pl.BlockSpec((1, CinH, W), lambda b, c: (b, 0, 0)),
            pl.BlockSpec((K, W, Wo), lambda b, c: (0, 0, 0)),
            pl.BlockSpec((rps, D1), lambda b, c: (c, 0)),
        ],
        out_specs=pl.BlockSpec((1, rpg, g * Wo), lambda b, c: (b, c, 0)),
        scratch_shapes=[pltpu.VMEM((D1, Wo), jnp.bfloat16)],
        compiler_params=pltpu.CompilerParams(
            # Batch axis parallel (megacore); chunk axis MUST be arbitrary so the patch
            # scratch filled at chunk 0 is valid for every later chunk of the same batch.
            dimension_semantics=("parallel", "arbitrary"),
            vmem_limit_bytes=_VMEM_LIMIT,
        ),
    )(x2d, cw, wr_k)

    # Free metadata reshape back to NCHW: (rows//g, g*Wo) is row-major identical to
    # (Cout, Ho, Wo).
    return out2d.reshape(B, Cout, Ho, Wo)


def _reference(img_nchw, w_hwio, bias, *, padding):
    """Pure-JAX f32 reference of the same forward pass."""
    x = jnp.where(img_nchw >= 0, img_nchw, 0.01 * img_nchw)
    x = jnp.transpose(x, (0, 2, 3, 1))                # NHWC
    x = jnp.repeat(jnp.repeat(x, 2, axis=1), 2, axis=2)
    y = jax.lax.conv_general_dilated(
        x, w_hwio, window_strides=(1, 1),
        padding=[(padding, padding), (padding, padding)],
        dimension_numbers=("NHWC", "HWIO", "NHWC"))
    y = y + bias.reshape(1, 1, 1, -1)
    return jnp.transpose(y, (0, 3, 1, 2))


if __name__ == "__main__":
    # Module config: cin=8, cout=16, k=3, stride=1, padding=1
    B, Cin, H, W = 2, 8, 16, 16
    Cout, K, PAD = 16, 3, 1

    key = jax.random.PRNGKey(0)
    k_img, k_w, k_b = jax.random.split(key, 3)

    img = jax.random.normal(k_img, (B, Cin, H, W), dtype=jnp.float32)

    # Deterministic kaiming-uniform-like weight init (fan_in = Cin * K * K)
    fan_in = Cin * K * K
    bound = float(np.sqrt(6.0 / fan_in))
    w_hwio = jax.random.uniform(k_w, (K, K, Cin, Cout), dtype=jnp.float32,
                                minval=-bound, maxval=bound)
    bias = 0.1 * jax.random.normal(k_b, (Cout,), dtype=jnp.float32)

    out = upscale_conv(img, w_hwio, bias, padding=PAD)
    out = jax.block_until_ready(out)

    ref = _reference(img, w_hwio, bias, padding=PAD)
    assert out.shape == (B, Cout, 2 * H, 2 * W), out.shape
    max_err = float(jnp.max(jnp.abs(out - ref)))
    # bf16 matmul operands with f32 accumulation -> ~1e-2-level absolute error vs f32 ref.
    assert jnp.allclose(out, ref, atol=5e-2, rtol=5e-2), max_err

    print("KERNEL_OK")
</pallas_src>

<mosaic_0001>
module attributes {stable_mosaic.version = 11 : i64} {
  func.func @kernel(%arg0: i32, %arg1: i32, %arg2: memref<1x128x16xf32, #tpu.memory_space<vmem>>, %arg3: memref<3x16x32xbf16, #tpu.memory_space<vmem>>, %arg4: memref<512x400xbf16, #tpu.memory_space<vmem>>, %arg5: memref<1x128x128xf32, #tpu.memory_space<vmem>>, %arg6: memref<400x32xbf16, #tpu.memory_space<vmem>>) attributes {dimension_semantics = [#tpu.dimension_semantics<parallel>, #tpu.dimension_semantics<arbitrary>], iteration_bounds = array<i64: 2, 1>, scalar_prefetch = 0 : i64, scratch_operands = 1 : i64, tpu.core_type = #tpu.core_type<tc>, window_params = [{transform_indices = @transform_0, window_bounds = array<i64: 1, 128, 16>}, {pipeline_mode = #tpu.pipeline_mode<synchronous>, transform_indices = @transform_1, window_bounds = array<i64: 3, 16, 32>}, {transform_indices = @transform_2, window_bounds = array<i64: 512, 400>}, {transform_indices = @transform_3, window_bounds = array<i64: 1, 128, 128>}]} {
    %c0_i32 = arith.constant 0 : i32
    %0 = arith.cmpi eq, %arg1, %c0_i32 : i32
    %1 = arith.extui %0 : i1 to i32
    %c0_i32_0 = arith.constant 0 : i32
    %2 = arith.cmpi ne, %1, %c0_i32_0 : i32
    scf.if %2 {
      %c0_13 = arith.constant 0 : index
      %c0_14 = arith.constant 0 : index
      %c0_15 = arith.constant 0 : index
      %16 = vector.load %arg2[%c0_13, %c0_14, %c0_15] : memref<1x128x16xf32, #tpu.memory_space<vmem>>, vector<1x128x16xf32>
      %17 = vector.shape_cast %16 : vector<1x128x16xf32> to vector<128x16xf32>
      %cst_16 = arith.constant 0.000000e+00 : f32
      %18 = vector.broadcast %cst_16 : f32 to vector<128x16xf32>
      %19 = arith.cmpf oge, %17, %18 : vector<128x16xf32>
      %cst_17 = arith.constant 0.00999999977 : f32
      %20 = vector.broadcast %cst_17 : f32 to vector<128x16xf32>
      %21 = arith.mulf %20, %17 : vector<128x16xf32>
      %22 = arith.select %19, %17, %21 : vector<128x16xi1>, vector<128x16xf32>
      %23 = arith.truncf %22 : vector<128x16xf32> to vector<128x16xbf16>
      %c0_18 = arith.constant 0 : index
      %c0_19 = arith.constant 0 : index
      %c0_20 = arith.constant 0 : index
      %24 = vector.load %arg3[%c0_18, %c0_19, %c0_20] : memref<3x16x32xbf16, #tpu.memory_space<vmem>>, vector<1x16x32xbf16>
      %25 = vector.shape_cast %24 : vector<1x16x32xbf16> to vector<16x32xbf16>
      %cst_21 = arith.constant dense<0.000000e+00> : vector<128x32xf32>
      %26 = tpu.matmul %23, %25, %cst_21 {dimension_numbers = #tpu.dot_dimension_numbers<[1], [0], [0], [1], [0, 0, 1, 1], [], []>} : vector<128x16xbf16>, vector<16x32xbf16>, vector<128x32xf32> -> vector<128x32xf32>
      %27 = arith.truncf %26 : vector<128x32xf32> to vector<128x32xbf16>
      %c0_22 = arith.constant 0 : index
      %c0_23 = arith.constant 0 : index
      %28 = vector.load %arg6[%c0_22, %c0_23] : memref<400x32xbf16, #tpu.memory_space<vmem>>, vector<128x32xbf16>
      tpu.vector_store %arg6[%c0_22, %c0_23], %27 {strides = array<i32>} : memref<400x32xbf16, #tpu.memory_space<vmem>>, vector<128x32xbf16>,
      %c1 = arith.constant 1 : index
      %c0_24 = arith.constant 0 : index
      %c0_25 = arith.constant 0 : index
      %29 = vector.load %arg3[%c1, %c0_24, %c0_25] : memref<3x16x32xbf16, #tpu.memory_space<vmem>>, vector<1x16x32xbf16>
      %30 = vector.shape_cast %29 : vector<1x16x32xbf16> to vector<16x32xbf16>
      %cst_26 = arith.constant dense<0.000000e+00> : vector<128x32xf32>
      %31 = tpu.matmul %23, %30, %cst_26 {dimension_numbers = #tpu.dot_dimension_numbers<[1], [0], [0], [1], [0, 0, 1, 1], [], []>} : vector<128x16xbf16>, vector<16x32xbf16>, vector<128x32xf32> -> vector<128x32xf32>
      %32 = arith.truncf %31 : vector<128x32xf32> to vector<128x32xbf16>
      %c128_27 = arith.constant 128 : index
      %c0_28 = arith.constant 0 : index
      %33 = vector.load %arg6[%c128_27, %c0_28] : memref<400x32xbf16, #tpu.memory_space<vmem>>, vector<128x32xbf16>
      tpu.vector_store %arg6[%c128_27, %c0_28], %32 {strides = array<i32>} : memref<400x32xbf16, #tpu.memory_space<vmem>>, vector<128x32xbf16>,
      %c2 = arith.constant 2 : index
      %c0_29 = arith.constant 0 : index
      %c0_30 = arith.constant 0 : index
      %34 = vector.load %arg3[%c2, %c0_29, %c0_30] : memref<3x16x32xbf16, #tpu.memory_space<vmem>>, vector<1x16x32xbf16>
      %35 = vector.shape_cast %34 : vector<1x16x32xbf16> to vector<16x32xbf16>
      %cst_31 = arith.constant dense<0.000000e+00> : vector<128x32xf32>
      %36 = tpu.matmul %23, %35, %cst_31 {dimension_numbers = #tpu.dot_dimension_numbers<[1], [0], [0], [1], [0, 0, 1, 1], [], []>} : vector<128x16xbf16>, vector<16x32xbf16>, vector<128x32xf32> -> vector<128x32xf32>
      %37 = arith.truncf %36 : vector<128x32xf32> to vector<128x32xbf16>
      %c256_32 = arith.constant 256 : index
      %c0_33 = arith.constant 0 : index
      %38 = vector.load %arg6[%c256_32, %c0_33] : memref<400x32xbf16, #tpu.memory_space<vmem>>, vector<128x32xbf16>
      tpu.vector_store %arg6[%c256_32, %c0_33], %37 {strides = array<i32>} : memref<400x32xbf16, #tpu.memory_space<vmem>>, vector<128x32xbf16>,
      %cst_34 = arith.constant 1.000000e+00 : bf16
      %39 = vector.broadcast %cst_34 : bf16 to vector<16x32xbf16>
      %c384_35 = arith.constant 384 : index
      %c0_36 = arith.constant 0 : index
      %40 = vector.load %arg6[%c384_35, %c0_36] : memref<400x32xbf16, #tpu.memory_space<vmem>>, vector<16x32xbf16>
      tpu.vector_store %arg6[%c384_35, %c0_36], %39 {strides = array<i32>} : memref<400x32xbf16, #tpu.memory_space<vmem>>, vector<16x32xbf16>,
    } else {
    }
    %c0 = arith.constant 0 : index
    %c0_1 = arith.constant 0 : index
    %3 = vector.load %arg6[%c0, %c0_1] : memref<400x32xbf16, #tpu.memory_space<vmem>>, vector<400x32xbf16>
    %c0_2 = arith.constant 0 : index
    %c0_3 = arith.constant 0 : index
    %4 = vector.load %arg4[%c0_2, %c0_3] : memref<512x400xbf16, #tpu.memory_space<vmem>>, vector<128x400xbf16>
    %cst = arith.constant dense<0.000000e+00> : vector<128x32xf32>
    %5 = tpu.matmul %4, %3, %cst {dimension_numbers = #tpu.dot_dimension_numbers<[1], [0], [0], [1], [0, 0, 1, 1], [], []>} : vector<128x400xbf16>, vector<400x32xbf16>, vector<128x32xf32> -> vector<128x32xf32>
    %c128 = arith.constant 128 : index
    %c0_4 = arith.constant 0 : index
    %6 = vector.load %arg4[%c128, %c0_4] : memref<512x400xbf16, #tpu.memory_space<vmem>>, vector<128x400xbf16>
    %cst_5 = arith.constant dense<0.000000e+00> : vector<128x32xf32>
    %7 = tpu.matmul %6, %3, %cst_5 {dimension_numbers = #tpu.dot_dimension_numbers<[1], [0], [0], [1], [0, 0, 1, 1], [], []>} : vector<128x400xbf16>, vector<400x32xbf16>, vector<128x32xf32> -> vector<128x32xf32>
    %c256 = arith.constant 256 : index
    %c0_6 = arith.constant 0 : index
    %8 = vector.load %arg4[%c256, %c0_6] : memref<512x400xbf16, #tpu.memory_space<vmem>>, vector<128x400xbf16>
    %cst_7 = arith.constant dense<0.000000e+00> : vector<128x32xf32>
    %9 = tpu.matmul %8, %3, %cst_7 {dimension_numbers = #tpu.dot_dimension_numbers<[1], [0], [0], [1], [0, 0, 1, 1], [], []>} : vector<128x400xbf16>, vector<400x32xbf16>, vector<128x32xf32> -> vector<128x32xf32>
    %c384 = arith.constant 384 : index
    %c0_8 = arith.constant 0 : index
    %10 = vector.load %arg4[%c384, %c0_8] : memref<512x400xbf16, #tpu.memory_space<vmem>>, vector<128x400xbf16>
    %cst_9 = arith.constant dense<0.000000e+00> : vector<128x32xf32>
    %11 = tpu.matmul %10, %3, %cst_9 {dimension_numbers = #tpu.dot_dimension_numbers<[1], [0], [0], [1], [0, 0, 1, 1], [], []>} : vector<128x400xbf16>, vector<400x32xbf16>, vector<128x32xf32> -> vector<128x32xf32>
    %12 = tpu.concatenate %5, %7, %9, %11 in 1 : vector<128x32xf32>, vector<128x32xf32>, vector<128x32xf32>, vector<128x32xf32> -> vector<128x128xf32>
    %c0_10 = arith.constant 0 : index
    %c0_11 = arith.constant 0 : index
    %c0_12 = arith.constant 0 : index
    %13 = vector.load %arg5[%c0_10, %c0_11, %c0_12] : memref<1x128x128xf32, #tpu.memory_space<vmem>>, vector<1x128x128xf32>
    %14 = vector.shape_cast %13 : vector<1x128x128xf32> to vector<128x128xf32>
    %15 = vector.shape_cast %12 : vector<128x128xf32> to vector<1x128x128xf32>
    tpu.vector_store %arg5[%c0_10, %c0_11, %c0_12], %15 {strides = array<i32>} : memref<1x128x128xf32, #tpu.memory_space<vmem>>, vector<1x128x128xf32>,
    return
  }
  func.func @transform_0(%arg0: i32, %arg1: i32) -> (i32, i32, i32) {
    %c0_i32 = arith.constant 0 : i32
    %c0_i32_0 = arith.constant 0 : i32
    %c0_i32_1 = arith.constant 0 : i32
    return %arg0, %c0_i32, %c0_i32_0 : i32, i32, i32
  }
  func.func @transform_1(%arg0: i32, %arg1: i32) -> (i32, i32, i32) {
    %c0_i32 = arith.constant 0 : i32
    %c0_i32_0 = arith.constant 0 : i32
    %c0_i32_1 = arith.constant 0 : i32
    %c0_i32_2 = arith.constant 0 : i32
    return %c0_i32, %c0_i32_0, %c0_i32_1 : i32, i32, i32
  }
  func.func @transform_2(%arg0: i32, %arg1: i32) -> (i32, i32) {
    %c0_i32 = arith.constant 0 : i32
    %c0_i32_0 = arith.constant 0 : i32
    return %arg1, %c0_i32 : i32, i32
  }
  func.func @transform_3(%arg0: i32, %arg1: i32) -> (i32, i32, i32) {
    %c0_i32 = arith.constant 0 : i32
    %c0_i32_0 = arith.constant 0 : i32
    return %arg0, %arg1, %c0_i32 : i32, i32, i32
  }
}

</mosaic_0001>

<bundles_post_ra>
// kernel: tpu_custom_call.1
= control target key start
LH: loop header
LB: loop body
LE: loop exit
PB: predicated region body
PF: predicated region fallthrough
CT: control target
= control target key end

     0   :  { %8 = vsyncpa [#allocation4], 0  ;;  %s4618_s0 = inlined_call_operand.vmem [shape: f32[2,128,16], index: 0, kind: input, shape index: {}]   ;;  %s4619_s1 = inlined_call_operand.vmem [shape: bf16[3,16,32], index: 1, kind: input, shape index: {}]   ;;  %s4620_s2 = inlined_call_operand.vmem [shape: bf16[512,400], index: 2, kind: input, shape index: {}]   ;;  %s4621_s3 = inlined_call_operand.hbm [shape: f32[2,128,128], index: 3, kind: output, shape index: {}]  }
   0x1   :  { %10 = vsyncpa [#allocation4 + $0x1], 0  ;;  %s3587_s12 = smov 0   ;;  %s3589_s13 = smov 0  }
   0x2   :  { %s3591_s14 = smov 0   ;;  %s3593_s15 = smov 0  }
   0x3   :  { %s3595_s16 = smov 0   ;;  %s3597_s17 = smov 0  }
   0x4 LB: > { %s2676_s18 = sadd.s32 4294967295, %s3557_s17   ;;  %s2677_s19 = sadd.s32 4294967294, %s3557_s17   ;;  %s3557_s17 = sphi %s3597_s17, %s16_s17   ;;  %s3553_s16 = sphi %s3595_s16, %s4628_s16   ;;  %s3549_s15 = sphi %s3593_s15, %s4627_s15   ;;  %s3545_s14 = sphi %s3591_s14, %s4626_s14   ;;  %s3541_s13 = sphi %s3589_s13, %s4625_s13   ;;  %s3537_s12 = sphi %s3587_s12, %s4624_s12  }
   0x5   : > { %s28_s20 = sadd.s32 1, %s3553_s16  ;;  %s110_s21 = sadd.s32 1, %s3545_s14 }
   0x6   : > { %p30_p0 = scmp.ge.s32.totalorder %s28_s20, 2  ;;  %p120_p1 = scmp.ne.s32.totalorder %s3545_s14, %s3541_s13 }
   0x7   : > { %p121_p2 = scmp.eq.s32.totalorder %s2676_s18, 1  ;;  %p126_p3 = scmp.ne.s32.totalorder %s3541_s13, %s3537_s12 }
   0x8   : > { %s4630_s20 = smov (%p30_p0, %s28_s20), 0  ;;  %p127_p5 = scmp.eq.s32.totalorder %s2677_s19, 1 }
   0x9   : > { %p3627_p4 = por %p121_p2, %p120_p1  ;;  %s105_s23 = ssub.s32 %s3553_s16, %s4630_s20 }
   0xa   : > { %p2681_p6 = scmp.ge.s32.totalorder %s3557_s17, 1  ;;  %p108_p7 = scmp.eq.s32.totalorder %s105_s23, 0 }
   0xb   : > { %p3634_p8 = por %p127_p5, %p126_p3  ;;  %p166_p9 = scmp.lt.s32.totalorder %s3557_s17, 3 }
   0xc   : > { %s3640_s25 = scalar_select %p108_p7, %s3545_s14, %s110_s21  }
   0xd   : > { %p167_p10 = pnand %p2681_p6, %p166_p9 }
   0xe   : > { %v3284_v0 = vld [vmem:[%s4619_s1] sm:$0xff] (!%p167_p10)   ;;  %p196_p11 = scmp.lt.s32.totalorder (!%p167_p10), %s3549_s15, 1  ;;  %v3649_v1 = vld [vmem:[%s4619_s1 + $0x8] sm:$0xff] (!%p167_p10)   ;;  %v3655_v2 = vld [vmem:[%s4619_s1 + $0x10] sm:$0xff] (!%p167_p10)   ;;  %vm295_vm0 = vcmask (!%p167_p10), 130048   ;;  %v3559_v59 = vmov (!%p167_p10), 0  }
   0xf   : > { %170 = sbr.rel (%p167_p10) target bundleno = 908 (0x38c), region = 32  ;;  %3166 = vmatprep.subr.bf16.mxu0 (!%p167_p10), %v3284_v0  ;;  %3220 = vmatprep.subr.bf16.mxu1 (!%p167_p10), %v3284_v0  ;;  %v3560_v60 = vmov (!%p167_p10), 1065369472   ;;  %v3289_v61 = vld [vmem:[%s4620_s2 + $0x4] ss:$16 sps:$4 sm:$0xff] (!%p167_p10)   ;;  %s3561_s11 = smov (!%p167_p10), 32  }
  0x10   : > { %3167 = vmatpush3.bf16.msra.mxu0 (!%p167_p10), %v3284_v0  ;;  %3221 = vmatpush3.bf16.msra.mxu1 (!%p167_p10), %v3284_v0  ;;  %v3292_v62 = vld [vmem:[%s4620_s2 + $0xc] ss:$16 sps:$4 sm:$0xff] (!%p167_p10)   ;;  %s3562_s18 = smov (!%p167_p10), 64   ;;  %s3563_s19 = smov (!%p167_p10), 96  }
  0x11   : > { %3184 = vmatprep.subr.bf16.mxu1 (!%p167_p10), %v3649_v1  ;;  %3202 = vmatprep.subr.bf16.mxu0 (!%p167_p10), %v3655_v2  ;;  %s193_s21 = sand.u32 (!%p167_p10), 1, %s3541_s13   ;;  %s2882_s27 = sshll.u32 (!%p167_p10), %s3549_s15, 11 }
  0x12   : > { %s2682_s23 = sshll.u32 (!%p167_p10), %s193_s21, 7  ;;  %s4560_s4 = scalar_lea.hbm (!%p167_p10), %s4621_s3, %s2882_s27 }
  0x13   : > { %s4498_s26 = scalar_lea.vmem (!%p167_p10), [#allocation3], %s2682_s23 }
  0x14   : > { %s2588_s28 = sshll.u32 (!%p167_p10), %s4498_s26, 4  ;;  %s4562_s28 = int_to_ptr.vmem [resolvable:$true] %s2588_s28 }
  0x15   : > { %s3479_s5 = scalar_lea.vmem (!%p167_p10), %s4562_s28, 2048 }
  0x16   : > { %s197_s30 = scalar_select %p196_p11, %s3549_s15, 1 }
  0x17   : > { %s4572_s15 = scalar_lea.sflag [#allocation4], %s193_s21  ;;  %p3480_p12 = scmp.ne.s32.totalorder %s4562_s28, %s3479_s5 }
  0x18   : > { %s2881_s6 = sshll.u32 %s197_s30, 7 }
  0x19   : > { %s3662_s9 = scalar_lea.vmem %s4618_s0, %s2881_s6  ;;  %p3481_p13 = pnand %p3480_p12, %p3627_p4 }
  0x1a   : > { %v215_v3 = vld [vmem:[%s3662_s9] sm:$0xff]  ;;  %v216_v4 = vld [vmem:[%s3662_s9 + $0x8] sm:$0xff]  ;;  %v217_v10 = vld [vmem:[%s3662_s9 + $0x10] sm:$0xff]  ;;  %s3564_s6 = smov [#allocation3]  }
  0x1b   : > { %v223_v5 = vld [vmem:[%s3662_s9 + $0x40] sm:$0xff]  ;;  %vm231_vm1 = vcmp.ge.f32.partialorder %v215_v3, 0.0  ;;  %vm232_vm2 = vcmp.ge.f32.partialorder %v216_v4, 0.0  ;;  %v247_v6 = vmul.f32 0.01, %v215_v3  ;;  %v224_v8 = vld [vmem:[%s3662_s9 + $0x48] sm:$0xff]  ;;  %p3482_p0 = pneg %p3481_p13 }
  0x1c   : > { %v248_v7 = vmul.f32 0.01, %v216_v4  ;;  %vm239_vm3 = vcmp.ge.f32.partialorder %v223_v5, 0.0  ;;  %v255_v9 = vmul.f32 0.01, %v223_v5  ;;  %v218_v11 = vld [vmem:[%s3662_s9 + $0x18] sm:$0xff] }
  0x1d   : > { %v263_v12 = vsel %vm231_vm1, %v215_v3, %v247_v6  ;;  %vm240_vm4 = vcmp.ge.f32.partialorder %v224_v8, 0.0  ;;  %v256_v14 = vmul.f32 0.01, %v224_v8  ;;  %v225_v15 = vld [vmem:[%s3662_s9 + $0x50] sm:$0xff]  ;;  %v226_v16 = vld [vmem:[%s3662_s9 + $0x58] sm:$0xff]  ;;  %vm233_vm5 = vcmp.ge.f32.partialorder %v217_v10, 0.0 }
  0x1e   : > { %v264_v13 = vsel %vm232_vm2, %v216_v4, %v248_v7  ;;  %v271_v18 = vsel %vm239_vm3, %v223_v5, %v255_v9  ;;  %vm234_vm6 = vcmp.ge.f32.partialorder %v218_v11, 0.0  ;;  %v219_v19 = vld [vmem:[%s3662_s9 + $0x20] sm:$0xff]  ;;  %v220_v20 = vld [vmem:[%s3662_s9 + $0x28] sm:$0xff]  ;;  %v249_v23 = vmul.f32 0.01, %v217_v10  ;;  %v221_v29 = vld [vmem:[%s3662_s9 + $0x30] sm:$0xff] }
  0x1f   : > { %v3672_v17 = vpack.c.bf16 %v264_v13, %v263_v12  ;;  %v227_v21 = vld [vmem:[%s3662_s9 + $0x60] sm:$0xff]  ;;  %v272_v22 = vsel %vm240_vm4, %v224_v8, %v256_v14  ;;  %v250_v24 = vmul.f32 0.01, %v218_v11  ;;  %vm241_vm7 = vcmp.ge.f32.partialorder %v225_v15, 0.0  ;;  %v228_v25 = vld [vmem:[%s3662_s9 + $0x68] sm:$0xff]  ;;  %v222_v32 = vld [vmem:[%s3662_s9 + $0x38] sm:$0xff] }
  0x20   : > { %v283_v26 = vpack.c.bf16 %v272_v22, %v271_v18  ;;  %vm242_vm8 = vcmp.ge.f32.partialorder %v226_v16, 0.0  ;;  %v257_v27 = vmul.f32 0.01, %v225_v15  ;;  %v258_v28 = vmul.f32 0.01, %v226_v16  ;;  %v229_v33 = vld [vmem:[%s3662_s9 + $0x70] sm:$0xff] }
  0x21   : > { %3168 = vmatprep.mubr.msk.bf16.mxu0 %vm295_vm0, %v3672_v17  ;;  %v265_v30 = vsel %vm233_vm5, %v217_v10, %v249_v23  ;;  %v266_v31 = vsel %vm234_vm6, %v218_v11, %v250_v24  ;;  %vm235_vm9 = vcmp.ge.f32.partialorder %v219_v19, 0.0  ;;  %vm236_vm10 = vcmp.ge.f32.partialorder %v220_v20, 0.0  ;;  %v230_v38 = vld [vmem:[%s3662_s9 + $0x78] sm:$0xff]  ;;  %s3483_s7 = sshll.u32 %s3564_s6, 4  ;;  %s3484_s7 = int_to_ptr.vmem [resolvable:$false] %s3483_s7 }
  0x22   : > { %3176 = vmatprep.mubr.msk.bf16.mxu1 %vm295_vm0, %v283_v26  ;;  %v280_v34 = vpack.c.bf16 %v266_v31, %v265_v30  ;;  %v273_v35 = vsel %vm241_vm7, %v225_v15, %v257_v27  ;;  %v274_v36 = vsel %vm242_vm8, %v226_v16, %v258_v28  ;;  %v251_v37 = vmul.f32 0.01, %v219_v19  ;;  %s3485_s8 = scalar_lea.vmem %s3484_s7, 4096  ;;  %p3486_p1 = scmp.lt.s32.totalorder %s4562_s28, %s3484_s7 }
  0x23   : > { %v284_v39 = vpack.c.bf16 %v274_v36, %v273_v35  ;;  %v252_v40 = vmul.f32 0.01, %v220_v20  ;;  %vm243_vm11 = vcmp.ge.f32.partialorder %v227_v21, 0.0  ;;  %vm244_vm12 = vcmp.ge.f32.partialorder %v228_v25, 0.0  ;;  %p3487_p2 = scmp.lt.s32.totalorder %s3485_s8, %s3479_s5 }
  0x24   : > { %3169 = vmatmul.mubr.msk.bf16.vlgmr.msra.gmra.mrb[0].mxu0 %vm295_vm0, %v280_v34  ;;  %v267_v41 = vsel %vm235_vm9, %v219_v19, %v251_v37  ;;  %v259_v42 = vmul.f32 0.01, %v227_v21  ;;  %v260_v43 = vmul.f32 0.01, %v228_v25  ;;  %vm237_vm13 = vcmp.ge.f32.partialorder %v221_v29, 0.0 }
  0x25   : > { %3177 = vmatmul.mubr.msk.bf16.vlgmr.msra.gmra.mrb[0].mxu1 %vm295_vm0, %v284_v39  ;;  %3203 = vmatpush3.bf16.msra.mxu0 %v3655_v2  ;;  %v268_v44 = vsel %vm236_vm10, %v220_v20, %v252_v40  ;;  %vm238_vm14 = vcmp.ge.f32.partialorder %v222_v32, 0.0  ;;  %v253_v45 = vmul.f32 0.01, %v221_v29  ;;  %v254_v46 = vmul.f32 0.01, %v222_v32  ;;  %p3488_p3 = por %p3487_p2, %p3486_p1 }
  0x26   : > { %3185 = vmatpush3.bf16.msra.mxu1 %v3649_v1  ;;  %v281_v47 = vpack.c.bf16 %v268_v44, %v267_v41  ;;  %v275_v48 = vsel %vm243_vm11, %v227_v21, %v259_v42  ;;  %v276_v49 = vsel %vm244_vm12, %v228_v25, %v260_v43  ;;  %vm245_vm15 = vcmp.ge.f32.partialorder %v229_v33, 0.0  ;;  %1010 = vmatprep.subr.bf16.mxu0 %v3559_v59 }
  0x27   : > { %v285_v50 = vpack.c.bf16 %v276_v49, %v275_v48  ;;  %v269_v51 = vsel %vm237_vm13, %v221_v29, %v253_v45  ;;  %v270_v52 = vsel %vm238_vm14, %v222_v32, %v254_v46  ;;  %vm246_vm1 = vcmp.ge.f32.partialorder %v230_v38, 0.0  ;;  %p3489_p5 = pnand %p3488_p3, %p3482_p0 }
  0x28   : > { %3172 = vmatprep.mubr.msk.bf16.mxu0 %vm295_vm0, %v281_v47  ;;  %v282_v53 = vpack.c.bf16 %v270_v52, %v269_v51  ;;  %v261_v54 = vmul.f32 0.01, %v229_v33  ;;  %v262_v55 = vmul.f32 0.01, %v230_v38  ;;  %vm425_vm2 = vcmask 261120  }
  0x29   : > { %3180 = vmatprep.mubr.msk.bf16.mxu1 %vm295_vm0, %v285_v50  ;;  %678 = vst.msk [vmem:[#allocation2 + $0xc0] sm:$0xff] %vm425_vm2, %v3560_v60  ;;  %vm2539_vm3 = vcmask 785408  }
  0x2a   : > { %v277_v56 = vsel %vm245_vm15, %v229_v33, %v261_v54  ;;  %v278_v57 = vsel %vm246_vm1, %v230_v38, %v262_v55 }
  0x2b   : > { %v286_v58 = vpack.c.bf16 %v278_v57, %v277_v56 }
  0x2c   : > { %3173 = vmatmul.mubr.msk.bf16.gmra.mrb[4].mxu0 %vm295_vm0, %v282_v53 }
  0x2d   : > { %3181 = vmatmul.mubr.msk.bf16.gmra.mrb[4].mxu1 %vm295_vm0, %v286_v58  ;;  %3204 = vmatprep.mubr.msk.bf16.mxu0 %vm295_vm0, %v3672_v17 }
  0x2e   : > { %3186 = vmatprep.mubr.msk.bf16.mxu1 %vm295_vm0, %v3672_v17 }
  0x34   : > { %3205 = vmatmul.mubr.msk.bf16.vlgmr.msra.gmra.mrb[8].mxu0 %vm295_vm0, %v280_v34 }
  0x35   : > { %3187 = vmatmul.mubr.msk.bf16.vlgmr.msra.gmra.mrb[8].mxu1 %vm295_vm0, %v280_v34  ;;  %3208 = vmatprep.mubr.msk.bf16.mxu0 %vm295_vm0, %v281_v47 }
  0x36   : > { %3190 = vmatprep.mubr.msk.bf16.mxu1 %vm295_vm0, %v281_v47 }
  0x3c   : > { %3209 = vmatmul.mubr.msk.bf16.gmra.mrb[12].mxu0 %vm295_vm0, %v282_v53 }
  0x3d   : > { %3191 = vmatmul.mubr.msk.bf16.gmra.mrb[12].mxu1 %vm295_vm0, %v282_v53  ;;  %3212 = vmatprep.mubr.msk.bf16.mxu0 %vm295_vm0, %v283_v26 }
  0x3e   : > { %3194 = vmatprep.mubr.msk.bf16.mxu1 %vm295_vm0, %v283_v26 }
  0x44   : > { %3213 = vmatmul.mubr.msk.bf16.gmra.mrb[16].mxu0 %vm295_vm0, %v284_v39 }
  0x45   : > { %3195 = vmatmul.mubr.msk.bf16.gmra.mrb[16].mxu1 %vm295_vm0, %v284_v39  ;;  %3216 = vmatprep.mubr.msk.bf16.mxu0 %vm295_vm0, %v285_v50 }
  0x46   : > { %3198 = vmatprep.mubr.msk.bf16.mxu1 %vm295_vm0, %v285_v50 }
  0x4c   : > { %3217 = vmatmul.mubr.msk.bf16.gmra.mrb[20].mxu0 %vm295_vm0, %v286_v58 }
  0x4d   : > { %3199 = vmatmul.mubr.msk.bf16.gmra.mrb[20].mxu1 %vm295_vm0, %v286_v58  ;;  %2748 = vmatprep.mubr.msk.bf16.mxu0 %vm295_vm0, %v3292_v62 }
  0x4e   : > { %945 = vmatprep.mubr.bf16.mxu1 %v3289_v61 }
  0xf7   : > { %v3170_v63 = vpop.f32.mrb[0].mxu0 }
  0xf8   : > { %v3178_v0 = vpop.f32.mrb[0].mxu1  ;;  %v354_v1 = vpop.f32.mrb[1].mxu0 }
  0xf9   : > { %v386_v2 = vpop.f32.mrb[1].mxu1  ;;  %v3171_v3 = vpop.f32.mrb[2].mxu0 }
  0xfa   : > { %v418_v4 = vpack.c.bf16 %v3171_v3, %v3170_v63  ;;  %v3179_v5 = vpop.f32.mrb[2].mxu1  ;;  %v357_v6 = vpop.f32.mrb[3].mxu0 }
  0xfb   : > { %v422_v7 = vpack.c.bf16 %v3179_v5, %v3178_v0  ;;  %v417_v8 = vpack.c.bf16 %v357_v6, %v354_v1  ;;  %v389_v9 = vpop.f32.mrb[3].mxu1 }
  0xfc   : > { %427 = vst.msk [vmem:[#allocation2 + $0x8] sm:$0xff] %vm425_vm2, %v418_v4  ;;  %v421_v10 = vpack.c.bf16 %v389_v9, %v386_v2 }
  0xfd   : > { %431 = vst.msk [vmem:[#allocation2 + $0x28] sm:$0xff] %vm425_vm2, %v422_v7  ;;  %426 = vst.msk [vmem:[#allocation2] sm:$0xff] %vm425_vm2, %v417_v8 }
  0xfe   : > { %430 = vst.msk [vmem:[#allocation2 + $0x20] sm:$0xff] %vm425_vm2, %v421_v10 }
  0xff   : > { %v3174_v11 = vpop.f32.mrb[4].mxu0 }
 0x100   : > { %v3182_v12 = vpop.f32.mrb[4].mxu1  ;;  %v370_v13 = vpop.f32.mrb[5].mxu0 }
 0x101   : > { %v402_v14 = vpop.f32.mrb[5].mxu1  ;;  %v3175_v15 = vpop.f32.mrb[6].mxu0 }
 0x102   : > { %v420_v16 = vpack.c.bf16 %v3175_v15, %v3174_v11  ;;  %v3183_v17 = vpop.f32.mrb[6].mxu1  ;;  %v373_v18 = vpop.f32.mrb[7].mxu0 }
 0x103   : > { %v424_v19 = vpack.c.bf16 %v3183_v17, %v3182_v12  ;;  %v419_v20 = vpack.c.bf16 %v373_v18, %v370_v13  ;;  %v405_v21 = vpop.f32.mrb[7].mxu1  ;;  %v3756_v61 = vld [vmem:[#allocation2 + $0x8] sm:$0xff] }
 0x104   : > { %429 = vst.msk [vmem:[#allocation2 + $0x18] sm:$0xff] %vm425_vm2, %v420_v16  ;;  %v423_v22 = vpack.c.bf16 %v405_v21, %v402_v14  ;;  %v3746_v49 = vld [vmem:[#allocation2] sm:$0xff] }
 0x105   : > { %433 = vst.msk [vmem:[#allocation2 + $0x38] sm:$0xff] %vm425_vm2, %v424_v19  ;;  %428 = vst.msk [vmem:[#allocation2 + $0x10] sm:$0xff] %vm425_vm2, %v419_v20 }
 0x106   : > { %432 = vst.msk [vmem:[#allocation2 + $0x30] sm:$0xff] %vm425_vm2, %v423_v22  ;;  %v3794_v22 = vld [vmem:[#allocation2 + $0x20] sm:$0xff] }
 0x107   : > { %v3206_v23 = vpop.f32.mrb[8].mxu0 }
 0x108   : > { %v3188_v24 = vpop.f32.mrb[8].mxu1  ;;  %v599_v25 = vpop.f32.mrb[9].mxu0 }
 0x109   : > { %v477_v26 = vpop.f32.mrb[9].mxu1  ;;  %v3207_v27 = vpop.f32.mrb[10].mxu0 }
 0x10a   : > { %v3189_v28 = vpop.f32.mrb[10].mxu1  ;;  %v663_v29 = vpack.c.bf16 %v3207_v27, %v3206_v23  ;;  %v602_v30 = vpop.f32.mrb[11].mxu0 }
 0x10b   : > { %v541_v31 = vpack.c.bf16 %v3189_v28, %v3188_v24  ;;  %v480_v32 = vpop.f32.mrb[11].mxu1  ;;  %v662_v33 = vpack.c.bf16 %v602_v30, %v599_v25  ;;  %v3780_v15 = vld [vmem:[#allocation2 + $0x18] sm:$0xff]  ;;  %v3804_v25 = vld [vmem:[#allocation2 + $0x28] sm:$0xff] }
 0x10c   : > { %671 = vst.msk [vmem:[#allocation2 + $0x88] sm:$0xff] %vm425_vm2, %v663_v29  ;;  %v540_v34 = vpack.c.bf16 %v480_v32, %v477_v26  ;;  %v3770_v4 = vld [vmem:[#allocation2 + $0x10] sm:$0xff] }
 0x10d   : > { %549 = vst.msk [vmem:[#allocation2 + $0x48] sm:$0xff] %vm425_vm2, %v541_v31  ;;  %670 = vst.msk [vmem:[#allocation2 + $0x80] sm:$0xff] %vm425_vm2, %v662_v33  ;;  %v3814_v28 = vld [vmem:[#allocation2 + $0x30] sm:$0xff]  ;;  %v3824_v31 = vld [vmem:[#allocation2 + $0x38] sm:$0xff] }
 0x10e   : > { %548 = vst.msk [vmem:[#allocation2 + $0x40] sm:$0xff] %vm425_vm2, %v540_v34  ;;  %v3287_v32 = vld [vmem:[%s4620_s2] ss:$16 sps:$4 sm:$0xff]   ;;  %v3293_v34 = vld [vmem:[%s4620_s2 + $0x24] ss:$16 sps:$4 sm:$0xff]  }
 0x10f   : > { %v3210_v35 = vpop.f32.mrb[12].mxu0  ;;  %v3830_v33 = vld [vmem:[#allocation2 + $0xc0] sm:$0xff] }
 0x110   : > { %v3192_v36 = vpop.f32.mrb[12].mxu1  ;;  %v615_v37 = vpop.f32.mrb[13].mxu0 }
 0x111   : > { %v493_v38 = vpop.f32.mrb[13].mxu1  ;;  %v3211_v39 = vpop.f32.mrb[14].mxu0 }
 0x112   : > { %v3193_v40 = vpop.f32.mrb[14].mxu1  ;;  %v665_v41 = vpack.c.bf16 %v3211_v39, %v3210_v35  ;;  %v618_v42 = vpop.f32.mrb[15].mxu0  ;;  %v3290_v35 = vld [vmem:[%s4620_s2 + $0x8] ss:$16 sps:$4 sm:$0xff]  }
 0x113   : > { %v543_v43 = vpack.c.bf16 %v3193_v40, %v3192_v36  ;;  %v496_v44 = vpop.f32.mrb[15].mxu1  ;;  %v664_v45 = vpack.c.bf16 %v618_v42, %v615_v37  ;;  %v3753_v54 = vld [vmem:[#allocation2 + $0x88] sm:$0xff]  ;;  %v3295_v37 = vld [vmem:[%s4620_s2 + $0x20] ss:$16 sps:$4 sm:$0xff]   ;;  %v3305_v42 = vld [vmem:[%s4620_s2 + $0x64] ss:$16 sps:$4 sm:$0xff]  }
 0x114   : > { %673 = vst.msk [vmem:[#allocation2 + $0x98] sm:$0xff] %vm425_vm2, %v665_v41  ;;  %v542_v46 = vpack.c.bf16 %v496_v44, %v493_v38  ;;  %v3737_v47 = vld [vmem:[#allocation2 + $0x80] sm:$0xff]  ;;  %v3750_v51 = vld [vmem:[#allocation2 + $0x48] sm:$0xff] }
 0x115   : > { %551 = vst.msk [vmem:[#allocation2 + $0x58] sm:$0xff] %vm425_vm2, %v543_v43  ;;  %672 = vst.msk [vmem:[#allocation2 + $0x90] sm:$0xff] %vm425_vm2, %v664_v45  ;;  %v3741_v48 = vld [vmem:[#allocation2 + $0x40] sm:$0xff]  ;;  %1011 = vmatpush1.bf16.msra.mxu0 %v3737_v47  ;;  %v3296_v36 = vld [vmem:[%s4620_s2 + $0x2c] ss:$16 sps:$4 sm:$0xff]  }
 0x116   : > { %550 = vst.msk [vmem:[#allocation2 + $0x50] sm:$0xff] %vm425_vm2, %v542_v46  ;;  %2910 = vmatprep.subr.bf16.mxu1 %v3741_v48  ;;  %1012 = vmatprep.subr.bf16.mxu0 %v3559_v59  ;;  %v3299_v38 = vld [vmem:[%s4620_s2 + $0x44] ss:$16 sps:$4 sm:$0xff]   ;;  %v3298_v39 = vld [vmem:[%s4620_s2 + $0x28] ss:$16 sps:$4 sm:$0xff]  }
 0x117   : > { %2911 = vmatpush3.bf16.msra.mxu1 %v3746_v49  ;;  %v3214_v50 = vpop.f32.mrb[16].mxu0  ;;  %v3302_v40 = vld [vmem:[%s4620_s2 + $0x4c] ss:$16 sps:$4 sm:$0xff]   ;;  %v3301_v41 = vld [vmem:[%s4620_s2 + $0x40] ss:$16 sps:$4 sm:$0xff]  }
 0x118   : > { %v3196_v52 = vpop.f32.mrb[16].mxu1  ;;  %2912 = vmatprep.subr.bf16.mxu1 %v3750_v51  ;;  %v631_v53 = vpop.f32.mrb[17].mxu0  ;;  %v3304_v43 = vld [vmem:[%s4620_s2 + $0x48] ss:$16 sps:$4 sm:$0xff]   ;;  %v3308_v44 = vld [vmem:[%s4620_s2 + $0x6c] ss:$16 sps:$4 sm:$0xff]  }
 0x119   : > { %v509_v55 = vpop.f32.mrb[17].mxu1  ;;  %v3215_v56 = vpop.f32.mrb[18].mxu0  ;;  %1013 = vmatpush1.bf16.msra.mxu0 %v3753_v54  ;;  %v3307_v45 = vld [vmem:[%s4620_s2 + $0x60] ss:$16 sps:$4 sm:$0xff]   ;;  %v3311_v46 = vld [vmem:[%s4620_s2 + $0x84] ss:$16 sps:$4 sm:$0xff]  }
 0x11a   : > { %v3197_v57 = vpop.f32.mrb[18].mxu1  ;;  %v667_v58 = vpack.c.bf16 %v3215_v56, %v3214_v50  ;;  %v634_v60 = vpop.f32.mrb[19].mxu0  ;;  %1014 = vmatprep.subr.bf16.mxu0 %v3559_v59  ;;  %v3310_v50 = vld [vmem:[%s4620_s2 + $0x68] ss:$16 sps:$4 sm:$0xff]  }
 0x11b   : > { %v545_v62 = vpack.c.bf16 %v3197_v57, %v3196_v52  ;;  %v512_v63 = vpop.f32.mrb[19].mxu1  ;;  %v666_v0 = vpack.c.bf16 %v634_v60, %v631_v53  ;;  %2913 = vmatpush3.bf16.msra.mxu1 %v3756_v61  ;;  %v3777_v9 = vld [vmem:[#allocation2 + $0x98] sm:$0xff]  ;;  %v3313_v53 = vld [vmem:[%s4620_s2 + $0x80] ss:$16 sps:$4 sm:$0xff]   ;;  %v3323_v60 = vld [vmem:[%s4620_s2 + $0xc4] ss:$16 sps:$4 sm:$0xff]  }
 0x11c   : > { %675 = vst.msk [vmem:[#allocation2 + $0xa8] sm:$0xff] %vm425_vm2, %v667_v58  ;;  %v544_v1 = vpack.c.bf16 %v512_v63, %v509_v55  ;;  %v3761_v2 = vld [vmem:[#allocation2 + $0x90] sm:$0xff]  ;;  %v3774_v6 = vld [vmem:[#allocation2 + $0x58] sm:$0xff] }
 0x11d   : > { %553 = vst.msk [vmem:[#allocation2 + $0x68] sm:$0xff] %vm425_vm2, %v545_v62  ;;  %674 = vst.msk [vmem:[#allocation2 + $0xa0] sm:$0xff] %vm425_vm2, %v666_v0  ;;  %v3765_v3 = vld [vmem:[#allocation2 + $0x50] sm:$0xff]  ;;  %1015 = vmatpush1.bf16.msra.mxu0 %v3761_v2  ;;  %v3314_v52 = vld [vmem:[%s4620_s2 + $0x8c] ss:$16 sps:$4 sm:$0xff]  }
 0x11e   : > { %552 = vst.msk [vmem:[#allocation2 + $0x60] sm:$0xff] %vm425_vm2, %v544_v1  ;;  %2914 = vmatprep.subr.bf16.mxu1 %v3765_v3  ;;  %1016 = vmatprep.subr.bf16.mxu0 %v3559_v59  ;;  %v3317_v55 = vld [vmem:[%s4620_s2 + $0xa4] ss:$16 sps:$4 sm:$0xff]   ;;  %v3316_v56 = vld [vmem:[%s4620_s2 + $0x88] ss:$16 sps:$4 sm:$0xff]  }
 0x11f   : > { %2915 = vmatpush3.bf16.msra.mxu1 %v3770_v4  ;;  %v3218_v5 = vpop.f32.mrb[20].mxu0  ;;  %v3320_v57 = vld [vmem:[%s4620_s2 + $0xac] ss:$16 sps:$4 sm:$0xff]   ;;  %v3319_v58 = vld [vmem:[%s4620_s2 + $0xa0] ss:$16 sps:$4 sm:$0xff]  }
 0x120   : > { %v3200_v7 = vpop.f32.mrb[20].mxu1  ;;  %2916 = vmatprep.subr.bf16.mxu1 %v3774_v6  ;;  %v647_v8 = vpop.f32.mrb[21].mxu0  ;;  %v3322_v62 = vld [vmem:[%s4620_s2 + $0xa8] ss:$16 sps:$4 sm:$0xff]   ;;  %v3326_v63 = vld [vmem:[%s4620_s2 + $0xcc] ss:$16 sps:$4 sm:$0xff]  }
 0x121   : > { %v525_v10 = vpop.f32.mrb[21].mxu1  ;;  %v3219_v11 = vpop.f32.mrb[22].mxu0  ;;  %1017 = vmatpush1.bf16.msra.mxu0 %v3777_v9  ;;  %v3325_v0 = vld [vmem:[%s4620_s2 + $0xc0] ss:$16 sps:$4 sm:$0xff]   ;;  %v3329_v1 = vld [vmem:[%s4620_s2 + $0xe4] ss:$16 sps:$4 sm:$0xff]  }
 0x122   : > { %v3201_v12 = vpop.f32.mrb[22].mxu1  ;;  %v669_v13 = vpack.c.bf16 %v3219_v11, %v3218_v5  ;;  %v650_v14 = vpop.f32.mrb[23].mxu0  ;;  %1018 = vmatprep.subr.bf16.mxu0 %v3559_v59  ;;  %v3328_v5 = vld [vmem:[%s4620_s2 + $0xc8] ss:$16 sps:$4 sm:$0xff]  }
 0x123   : > { %v547_v16 = vpack.c.bf16 %v3201_v12, %v3200_v7  ;;  %v528_v17 = vpop.f32.mrb[23].mxu1  ;;  %v668_v18 = vpack.c.bf16 %v650_v14, %v647_v8  ;;  %2917 = vmatpush3.bf16.msra.mxu1 %v3780_v15  ;;  %v3801_v24 = vld [vmem:[#allocation2 + $0xa8] sm:$0xff]  ;;  %v3331_v8 = vld [vmem:[%s4620_s2 + $0xe0] ss:$16 sps:$4 sm:$0xff]   ;;  %v3341_v14 = vld [vmem:[%s4620_s2 + $0x124] ss:$16 sps:$4 sm:$0xff]  }
 0x124   : > { %677 = vst.msk [vmem:[#allocation2 + $0xb8] sm:$0xff] %vm425_vm2, %v669_v13  ;;  %v546_v19 = vpack.c.bf16 %v528_v17, %v525_v10  ;;  %v3785_v20 = vld [vmem:[#allocation2 + $0xa0] sm:$0xff]  ;;  %v3798_v23 = vld [vmem:[#allocation2 + $0x68] sm:$0xff] }
 0x125   : > { %555 = vst.msk [vmem:[#allocation2 + $0x78] sm:$0xff] %vm425_vm2, %v547_v16  ;;  %676 = vst.msk [vmem:[#allocation2 + $0xb0] sm:$0xff] %vm425_vm2, %v668_v18  ;;  %v3789_v21 = vld [vmem:[#allocation2 + $0x60] sm:$0xff]  ;;  %1019 = vmatpush1.bf16.msra.mxu0 %v3785_v20  ;;  %v3332_v7 = vld [vmem:[%s4620_s2 + $0xec] ss:$16 sps:$4 sm:$0xff]  }
 0x126   : > { %554 = vst.msk [vmem:[#allocation2 + $0x70] sm:$0xff] %vm425_vm2, %v546_v19  ;;  %2918 = vmatprep.subr.bf16.mxu1 %v3789_v21  ;;  %1020 = vmatprep.subr.bf16.mxu0 %v3559_v59  ;;  %v3337_v10 = vld [vmem:[%s4620_s2 + $0x104] ss:$16 sps:$4 sm:$0xff]   ;;  %v3334_v11 = vld [vmem:[%s4620_s2 + $0xe8] ss:$16 sps:$4 sm:$0xff]  }
 0x127   : > { %2919 = vmatpush3.bf16.msra.mxu1 %v3794_v22  ;;  %v3340_v12 = vld [vmem:[%s4620_s2 + $0x10c] ss:$16 sps:$4 sm:$0xff]   ;;  %v3335_v13 = vld [vmem:[%s4620_s2 + $0x100] ss:$16 sps:$4 sm:$0xff]   ;;  %v3338_v16 = vld [vmem:[%s4620_s2 + $0x108] ss:$16 sps:$4 sm:$0xff]  }
 0x128   : > { %2920 = vmatprep.subr.bf16.mxu1 %v3798_v23  ;;  %v3344_v17 = vld [vmem:[%s4620_s2 + $0x12c] ss:$16 sps:$4 sm:$0xff]   ;;  %v3343_v18 = vld [vmem:[%s4620_s2 + $0x120] ss:$16 sps:$4 sm:$0xff]   ;;  %v3347_v19 = vld [vmem:[%s4620_s2 + $0x144] ss:$16 sps:$4 sm:$0xff]  }
 0x129   : > { %1021 = vmatpush1.bf16.msra.mxu0 %v3801_v24 }
 0x12a   : > { %1022 = vmatprep.subr.bf16.mxu0 %v3559_v59 }
 0x12b   : > { %2921 = vmatpush3.bf16.msra.mxu1 %v3804_v25  ;;  %v3821_v30 = vld [vmem:[#allocation2 + $0xb8] sm:$0xff] }
 0x12c   : > { %v3808_v26 = vld [vmem:[#allocation2 + $0xb0] sm:$0xff]  ;;  %v3818_v29 = vld [vmem:[#allocation2 + $0x78] sm:$0xff] }
 0x12d   : > { %v3810_v27 = vld [vmem:[#allocation2 + $0x70] sm:$0xff]  ;;  %1023 = vmatpush1.bf16.msra.mxu0 %v3808_v26 }
 0x12e   : > { %2922 = vmatprep.subr.bf16.mxu1 %v3810_v27  ;;  %1024 = vmatprep.subr.bf16.mxu0 %v3559_v59 }
 0x12f   : > { %2923 = vmatpush3.bf16.msra.mxu1 %v3814_v28 }
 0x130   : > { %2924 = vmatprep.subr.bf16.mxu1 %v3818_v29 }
 0x131   : > { %1025 = vmatpush1.bf16.msra.mxu0 %v3821_v30 }
 0x132   : > { %1026 = vmatprep.subr.bf16.mxu0 %v3559_v59 }
 0x133   : > { %2925 = vmatpush3.bf16.msra.mxu1 %v3824_v31 }
 0x134   : > { %2974 = vmatprep.subr.bf16.mxu1 %v3741_v48 }
 0x135   : > { %1027 = vmatpush1.bf16.msra.mxu0 %v3830_v33 }
 0x136   : > { %946 = vmatmul.mubr.bf16.vlgmr.msra.gmra.mrb[24].mxu1 %v3287_v32  ;;  %1412 = vmatprep.subr.bf16.mxu0 %v3559_v59  ;;  %v3346_v32 = vld [vmem:[%s4620_s2 + $0x128] ss:$16 sps:$4 sm:$0xff]  }
 0x137   : > { %2975 = vmatpush3.bf16.msra.mxu1 %v3746_v49  ;;  %953 = vmatprep.mubr.bf16.mxu1 %v3293_v34  ;;  %v3350_v34 = vld [vmem:[%s4620_s2 + $0x14c] ss:$16 sps:$4 sm:$0xff]  }
 0x138   : > { %2976 = vmatprep.subr.bf16.mxu1 %v3750_v51  ;;  %1043 = vmatmul.mubr.bf16.vlgmr.msra.gmra.mrb[24].mxu0 %v3290_v35  ;;  %v3349_v35 = vld [vmem:[%s4620_s2 + $0x140] ss:$16 sps:$4 sm:$0xff]  }
 0x139   : > { %1413 = vmatpush1.bf16.msra.mxu0 %v3737_v47  ;;  %2749 = vmatprep.mubr.msk.bf16.mxu0 %vm295_vm0, %v3296_v36  ;;  %v3353_v36 = vld [vmem:[%s4620_s2 + $0x164] ss:$16 sps:$4 sm:$0xff]  }
 0x13a   : > { %1414 = vmatprep.subr.bf16.mxu0 %v3559_v59 }
 0x13b   : > { %2977 = vmatpush3.bf16.msra.mxu1 %v3756_v61 }
 0x13c   : > { %2978 = vmatprep.subr.bf16.mxu1 %v3765_v3 }
 0x13d   : > { %1415 = vmatpush1.bf16.msra.mxu0 %v3753_v54 }
 0x13e   : > { %954 = vmatmul.mubr.bf16.gmra.mrb[28].mxu1 %v3295_v37  ;;  %1416 = vmatprep.subr.bf16.mxu0 %v3559_v59  ;;  %v3352_v37 = vld [vmem:[%s4620_s2 + $0x148] ss:$16 sps:$4 sm:$0xff]  }
 0x13f   : > { %2979 = vmatpush3.bf16.msra.mxu1 %v3770_v4  ;;  %961 = vmatprep.mubr.bf16.mxu1 %v3299_v38  ;;  %v3356_v38 = vld [vmem:[%s4620_s2 + $0x16c] ss:$16 sps:$4 sm:$0xff]  }
 0x140   : > { %2980 = vmatprep.subr.bf16.mxu1 %v3774_v6  ;;  %1051 = vmatmul.mubr.bf16.gmra.mrb[28].mxu0 %v3298_v39  ;;  %v3355_v39 = vld [vmem:[%s4620_s2 + $0x160] ss:$16 sps:$4 sm:$0xff]  }
 0x141   : > { %1417 = vmatpush1.bf16.msra.mxu0 %v3761_v2  ;;  %2750 = vmatprep.mubr.msk.bf16.mxu0 %vm295_vm0, %v3302_v40  ;;  %v3359_v40 = vld [vmem:[%s4620_s2 + $0x184] ss:$16 sps:$4 sm:$0xff]  }
 0x142   : > { %1418 = vmatprep.subr.bf16.mxu0 %v3559_v59 }
 0x143   : > { %2981 = vmatpush3.bf16.msra.mxu1 %v3780_v15 }
 0x144   : > { %2982 = vmatprep.subr.bf16.mxu1 %v3789_v21 }
 0x145   : > { %1419 = vmatpush1.bf16.msra.mxu0 %v3777_v9 }
 0x146   : > { %962 = vmatmul.mubr.bf16.gmra.mrb[32].mxu1 %v3301_v41  ;;  %1420 = vmatprep.subr.bf16.mxu0 %v3559_v59  ;;  %v3358_v41 = vld [vmem:[%s4620_s2 + $0x168] ss:$16 sps:$4 sm:$0xff]  }
 0x147   : > { %2983 = vmatpush3.bf16.msra.mxu1 %v3794_v22  ;;  %969 = vmatprep.mubr.bf16.mxu1 %v3305_v42  ;;  %v3362_v42 = vld [vmem:[%s4620_s2 + $0x18c] ss:$16 sps:$4 sm:$0xff]  }
 0x148   : > { %2984 = vmatprep.subr.bf16.mxu1 %v3798_v23  ;;  %1059 = vmatmul.mubr.bf16.gmra.mrb[32].mxu0 %v3304_v43  ;;  %v3361_v43 = vld [vmem:[%s4620_s2 + $0x180] ss:$16 sps:$4 sm:$0xff]  }
 0x149   : > { %1421 = vmatpush1.bf16.msra.mxu0 %v3785_v20  ;;  %2751 = vmatprep.mubr.msk.bf16.mxu0 %vm295_vm0, %v3308_v44  ;;  %v3365_v44 = vld [vmem:[%s4620_s2 + $0x1a4] ss:$16 sps:$4 sm:$0xff]  }
 0x14a   : > { %1422 = vmatprep.subr.bf16.mxu0 %v3559_v59 }
 0x14b   : > { %2985 = vmatpush3.bf16.msra.mxu1 %v3804_v25 }
 0x14c   : > { %2986 = vmatprep.subr.bf16.mxu1 %v3810_v27 }
 0x14d   : > { %1423 = vmatpush1.bf16.msra.mxu0 %v3801_v24 }
 0x14e   : > { %970 = vmatmul.mubr.bf16.gmra.mrb[36].mxu1 %v3307_v45  ;;  %1424 = vmatprep.subr.bf16.mxu0 %v3559_v59  ;;  %v3364_v45 = vld [vmem:[%s4620_s2 + $0x188] ss:$16 sps:$4 sm:$0xff]  }
 0x14f   : > { %2987 = vmatpush3.bf16.msra.mxu1 %v3814_v28  ;;  %977 = vmatprep.mubr.bf16.mxu1 %v3311_v46  ;;  %v3368_v46 = vld [vmem:[%s4620_s2 + $0x1ac] ss:$16 sps:$4 sm:$0xff]  }
 0x150   : > { %2988 = vmatprep.subr.bf16.mxu1 %v3818_v29  ;;  %1067 = vmatmul.mubr.bf16.gmra.mrb[36].mxu0 %v3310_v50  ;;  %v3371_v50 = vld [vmem:[%s4620_s2 + $0x1c4] ss:$16 sps:$4 sm:$0xff]  }
 0x151   : > { %1425 = vmatpush1.bf16.msra.mxu0 %v3808_v26  ;;  %2752 = vmatprep.mubr.msk.bf16.mxu0 %vm295_vm0, %v3314_v52  ;;  %v3370_v52 = vld [vmem:[%s4620_s2 + $0x1a8] ss:$16 sps:$4 sm:$0xff]  }
 0x152   : > { %1426 = vmatprep.subr.bf16.mxu0 %v3559_v59 }
 0x153   : > { %2989 = vmatpush3.bf16.msra.mxu1 %v3824_v31 }
 0x154   : > { %3038 = vmatprep.subr.bf16.mxu1 %v3741_v48 }
 0x155   : > { %1427 = vmatpush1.bf16.msra.mxu0 %v3821_v30 }
 0x156   : > { %978 = vmatmul.mubr.bf16.gmra.mrb[40].mxu1 %v3313_v53  ;;  %1428 = vmatprep.subr.bf16.mxu0 %v3559_v59  ;;  %v3374_v53 = vld [vmem:[%s4620_s2 + $0x1cc] ss:$16 sps:$4 sm:$0xff]  }
 0x157   : > { %985 = vmatprep.mubr.bf16.mxu1 %v3317_v55  ;;  %v3373_v55 = vld [vmem:[%s4620_s2 + $0x1c0] ss:$16 sps:$4 sm:$0xff]  }
 0x158   : > { %1075 = vmatmul.mubr.bf16.gmra.mrb[40].mxu0 %v3316_v56  ;;  %v3377_v56 = vld [vmem:[%s4620_s2 + $0x1e4] ss:$16 sps:$4 sm:$0xff]  }
 0x159   : > { %2753 = vmatprep.mubr.msk.bf16.mxu0 %vm295_vm0, %v3320_v57  ;;  %1429 = vmatpush1.bf16.msra.mxu0 %v3830_v33  ;;  %v3376_v57 = vld [vmem:[%s4620_s2 + $0x1c8] ss:$16 sps:$4 sm:$0xff]  }
 0x15a   : > { %1814 = vmatprep.subr.bf16.mxu0 %v3559_v59 }
 0x15e   : > { %986 = vmatmul.mubr.bf16.gmra.mrb[44].mxu1 %v3319_v58  ;;  %v3380_v58 = vld [vmem:[%s4620_s2 + $0x1ec] ss:$16 sps:$4 sm:$0xff]  }
 0x15f   : > { %993 = vmatprep.mubr.bf16.mxu1 %v3323_v60  ;;  %v3379_v60 = vld [vmem:[%s4620_s2 + $0x1e0] ss:$16 sps:$4 sm:$0xff]  }
 0x160   : > { %1083 = vmatmul.mubr.bf16.gmra.mrb[44].mxu0 %v3322_v62  ;;  %v3385_v62 = vld [vmem:[%s4620_s2 + $0x204] ss:$16 sps:$4 sm:$0xff]  }
 0x161   : > { %2754 = vmatprep.mubr.msk.bf16.mxu0 %vm295_vm0, %v3326_v63  ;;  %v3382_v63 = vld [vmem:[%s4620_s2 + $0x1e8] ss:$16 sps:$4 sm:$0xff]  }
 0x166   : > { %994 = vmatmul.mubr.bf16.gmra.mrb[48].mxu1 %v3325_v0  ;;  %v3388_v0 = vld [vmem:[%s4620_s2 + $0x20c] ss:$16 sps:$4 sm:$0xff]  }
 0x167   : > { %1001 = vmatprep.mubr.bf16.mxu1 %v3329_v1  ;;  %v3383_v1 = vld [vmem:[%s4620_s2 + $0x200] ss:$16 sps:$4 sm:$0xff]  }
 0x168   : > { %1091 = vmatmul.mubr.bf16.gmra.mrb[48].mxu0 %v3328_v5  ;;  %v3389_v5 = vld [vmem:[%s4620_s2 + $0x224] ss:$16 sps:$4 sm:$0xff]  }
 0x169   : > { %2755 = vmatprep.mubr.msk.bf16.mxu0 %vm295_vm0, %v3332_v7  ;;  %v3386_v7 = vld [vmem:[%s4620_s2 + $0x208] ss:$16 sps:$4 sm:$0xff]  }
 0x16e   : > { %1002 = vmatmul.mubr.bf16.gmra.mrb[52].mxu1 %v3331_v8  ;;  %v3392_v8 = vld [vmem:[%s4620_s2 + $0x22c] ss:$16 sps:$4 sm:$0xff]  }
 0x16f   : > { %1347 = vmatprep.mubr.bf16.mxu1 %v3337_v10  ;;  %v3391_v10 = vld [vmem:[%s4620_s2 + $0x220] ss:$16 sps:$4 sm:$0xff]  }
 0x170   : > { %1099 = vmatmul.mubr.bf16.gmra.mrb[52].mxu0 %v3334_v11  ;;  %v3430_v11 = vld [vmem:[%s4620_s2 + $0x2e8] ss:$16 sps:$4 sm:$0xff]  }
 0x171   : > { %2788 = vmatprep.mubr.msk.bf16.mxu0 %vm295_vm0, %v3340_v12  ;;  %v3436_v12 = vld [vmem:[%s4620_s2 + $0x30c] ss:$16 sps:$4 sm:$0xff]  }
 0x176   : > { %1348 = vmatmul.mubr.bf16.vlgmr.msra.gmra.mrb[56].mxu1 %v3335_v13  ;;  %v3431_v13 = vld [vmem:[%s4620_s2 + $0x300] ss:$16 sps:$4 sm:$0xff]  }
 0x177   : > { %3039 = vmatpush3.bf16.msra.mxu1 %v3746_v49  ;;  %1355 = vmatprep.mubr.bf16.mxu1 %v3341_v14  ;;  %v3437_v14 = vld [vmem:[%s4620_s2 + $0x324] ss:$16 sps:$4 sm:$0xff]  }
 0x178   : > { %3040 = vmatprep.subr.bf16.mxu1 %v3750_v51  ;;  %1445 = vmatmul.mubr.bf16.vlgmr.msra.gmra.mrb[56].mxu0 %v3338_v16  ;;  %v3434_v16 = vld [vmem:[%s4620_s2 + $0x308] ss:$16 sps:$4 sm:$0xff]  }
 0x179   : > { %1815 = vmatpush1.bf16.msra.mxu0 %v3737_v47  ;;  %2789 = vmatprep.mubr.msk.bf16.mxu0 %vm295_vm0, %v3344_v17  ;;  %v3440_v17 = vld [vmem:[%s4620_s2 + $0x32c] ss:$16 sps:$4 sm:$0xff]  }
 0x17a   : > { %1816 = vmatprep.subr.bf16.mxu0 %v3559_v59 }
 0x17b   : > { %3041 = vmatpush3.bf16.msra.mxu1 %v3756_v61 }
 0x17c   : > { %3042 = vmatprep.subr.bf16.mxu1 %v3765_v3 }
 0x17d   : > { %1817 = vmatpush1.bf16.msra.mxu0 %v3753_v54 }
 0x17e   : > { %1356 = vmatmul.mubr.bf16.gmra.mrb[60].mxu1 %v3343_v18  ;;  %1818 = vmatprep.subr.bf16.mxu0 %v3559_v59  ;;  %v3439_v18 = vld [vmem:[%s4620_s2 + $0x320] ss:$16 sps:$4 sm:$0xff]  }
 0x17f   : > { %3043 = vmatpush3.bf16.msra.mxu1 %v3770_v4  ;;  %1363 = vmatprep.mubr.bf16.mxu1 %v3347_v19  ;;  %v3443_v19 = vld [vmem:[%s4620_s2 + $0x344] ss:$16 sps:$4 sm:$0xff]  }
 0x180   : > { %3044 = vmatprep.subr.bf16.mxu1 %v3774_v6  ;;  %1453 = vmatmul.mubr.bf16.gmra.mrb[60].mxu0 %v3346_v32  ;;  %v3442_v32 = vld [vmem:[%s4620_s2 + $0x328] ss:$16 sps:$4 sm:$0xff]  }
 0x181   : > { %1819 = vmatpush1.bf16.msra.mxu0 %v3761_v2  ;;  %2790 = vmatprep.mubr.msk.bf16.mxu0 %vm295_vm0, %v3350_v34  ;;  %v3446_v34 = vld [vmem:[%s4620_s2 + $0x34c] ss:$16 sps:$4 sm:$0xff]  }
 0x182   : > { %1820 = vmatprep.subr.bf16.mxu0 %v3559_v59 }
 0x183   : > { %3045 = vmatpush3.bf16.msra.mxu1 %v3780_v15 }
 0x184   : > { %3046 = vmatprep.subr.bf16.mxu1 %v3789_v21 }
 0x185   : > { %1821 = vmatpush1.bf16.msra.mxu0 %v3777_v9 }
 0x186   : > { %1364 = vmatmul.mubr.bf16.gmra.mrb[64].mxu1 %v3349_v35  ;;  %1822 = vmatprep.subr.bf16.mxu0 %v3559_v59  ;;  %v3445_v35 = vld [vmem:[%s4620_s2 + $0x340] ss:$16 sps:$4 sm:$0xff]  }
 0x187   : > { %3047 = vmatpush3.bf16.msra.mxu1 %v3794_v22  ;;  %1371 = vmatprep.mubr.bf16.mxu1 %v3353_v36  ;;  %v3449_v36 = vld [vmem:[%s4620_s2 + $0x364] ss:$16 sps:$4 sm:$0xff]  }
 0x188   : > { %3048 = vmatprep.subr.bf16.mxu1 %v3798_v23  ;;  %1461 = vmatmul.mubr.bf16.gmra.mrb[64].mxu0 %v3352_v37  ;;  %v3448_v37 = vld [vmem:[%s4620_s2 + $0x348] ss:$16 sps:$4 sm:$0xff]  }
 0x189   : > { %1823 = vmatpush1.bf16.msra.mxu0 %v3785_v20  ;;  %2791 = vmatprep.mubr.msk.bf16.mxu0 %vm295_vm0, %v3356_v38  ;;  %v3452_v38 = vld [vmem:[%s4620_s2 + $0x36c] ss:$16 sps:$4 sm:$0xff]  }
 0x18a   : > { %1824 = vmatprep.subr.bf16.mxu0 %v3559_v59 }
 0x18b   : > { %3049 = vmatpush3.bf16.msra.mxu1 %v3804_v25 }
 0x18c   : > { %3050 = vmatprep.subr.bf16.mxu1 %v3810_v27 }
 0x18d   : > { %1825 = vmatpush1.bf16.msra.mxu0 %v3801_v24 }
 0x18e   : > { %1372 = vmatmul.mubr.bf16.gmra.mrb[68].mxu1 %v3355_v39  ;;  %1826 = vmatprep.subr.bf16.mxu0 %v3559_v59 }
 0x18f   : > { %3051 = vmatpush3.bf16.msra.mxu1 %v3814_v28  ;;  %1379 = vmatprep.mubr.bf16.mxu1 %v3359_v40 }
 0x190   : > { %3052 = vmatprep.subr.bf16.mxu1 %v3818_v29  ;;  %1469 = vmatmul.mubr.bf16.gmra.mrb[68].mxu0 %v3358_v41  ;;  %v3451_v41 = vld [vmem:[%s4620_s2 + $0x360] ss:$16 sps:$4 sm:$0xff]  }
 0x191   : > { %1827 = vmatpush1.bf16.msra.mxu0 %v3808_v26  ;;  %2792 = vmatprep.mubr.msk.bf16.mxu0 %vm295_vm0, %v3362_v42 }
 0x192   : > { %1828 = vmatprep.subr.bf16.mxu0 %v3559_v59 }
 0x193   : > { %3053 = vmatpush3.bf16.msra.mxu1 %v3824_v31 }
 0x194   : > { %3102 = vmatprep.subr.bf16.mxu1 %v3741_v48  ;;  %v3367_v48 = vld [vmem:[%s4620_s2 + $0x1a0] ss:$16 sps:$4 sm:$0xff]  }
 0x195   : > { %1829 = vmatpush1.bf16.msra.mxu0 %v3821_v30 }
 0x196   : > { %1380 = vmatmul.mubr.bf16.gmra.mrb[72].mxu1 %v3361_v43  ;;  %1830 = vmatprep.subr.bf16.mxu0 %v3559_v59 }
 0x197   : > { %1387 = vmatprep.mubr.bf16.mxu1 %v3365_v44 }
 0x198   : > { %1477 = vmatmul.mubr.bf16.gmra.mrb[72].mxu0 %v3364_v45  ;;  %v3455_v45 = vld [vmem:[%s4620_s2 + $0x384] ss:$16 sps:$4 sm:$0xff]  }
 0x199   : > { %2793 = vmatprep.mubr.msk.bf16.mxu0 %vm295_vm0, %v3368_v46  ;;  %1831 = vmatpush1.bf16.msra.mxu0 %v3830_v33 }
 0x19a   : > { %2216 = vmatprep.subr.bf16.mxu0 %v3559_v59 }
 0x19e   : > { %1388 = vmatmul.mubr.bf16.gmra.mrb[76].mxu1 %v3367_v48 }
 0x19f   : > { %1395 = vmatprep.mubr.bf16.mxu1 %v3371_v50  ;;  %v3454_v50 = vld [vmem:[%s4620_s2 + $0x368] ss:$16 sps:$4 sm:$0xff]  }
 0x1a0   : > { %1485 = vmatmul.mubr.bf16.gmra.mrb[76].mxu0 %v3370_v52 }
 0x1a1   : > { %2794 = vmatprep.mubr.msk.bf16.mxu0 %vm295_vm0, %v3374_v53 }
 0x1a6   : > { %1396 = vmatmul.mubr.bf16.gmra.mrb[80].mxu1 %v3373_v55 }
 0x1a7   : > { %1403 = vmatprep.mubr.bf16.mxu1 %v3377_v56  ;;  %v3458_v56 = vld [vmem:[%s4620_s2 + $0x38c] ss:$16 sps:$4 sm:$0xff]  }
 0x1a8   : > { %1493 = vmatmul.mubr.bf16.gmra.mrb[80].mxu0 %v3376_v57 }
 0x1a9   : > { %2795 = vmatprep.mubr.msk.bf16.mxu0 %vm295_vm0, %v3380_v58 }
 0x1ae   : > { %1404 = vmatmul.mubr.bf16.gmra.mrb[84].mxu1 %v3379_v60 }
 0x1af   : > { %1749 = vmatprep.mubr.bf16.mxu1 %v3385_v62 }
 0x1b0   : > { %1501 = vmatmul.mubr.bf16.gmra.mrb[84].mxu0 %v3382_v63  ;;  %v3457_v63 = vld [vmem:[%s4620_s2 + $0x380] ss:$16 sps:$4 sm:$0xff]  }
 0x1b1   : > { %2828 = vmatprep.mubr.msk.bf16.mxu0 %vm295_vm0, %v3388_v0 }
 0x1b6   : > { %1750 = vmatmul.mubr.bf16.vlgmr.msra.gmra.mrb[88].mxu1 %v3383_v1 }
 0x1b7   : > { %3103 = vmatpush3.bf16.msra.mxu1 %v3746_v49  ;;  %1757 = vmatprep.mubr.bf16.mxu1 %v3389_v5  ;;  %v3395_v49 = vld [vmem:[%s4620_s2 + $0x244] ss:$16 sps:$4 sm:$0xff]  }
 0x1b8   : > { %3104 = vmatprep.subr.bf16.mxu1 %v3750_v51  ;;  %1847 = vmatmul.mubr.bf16.vlgmr.msra.gmra.mrb[88].mxu0 %v3386_v7  ;;  %v3398_v51 = vld [vmem:[%s4620_s2 + $0x24c] ss:$16 sps:$4 sm:$0xff]   ;;  %v3461_v7 = vld [vmem:[%s4620_s2 + $0x3a4] ss:$16 sps:$4 sm:$0xff]  }
 0x1b9   : > { %2217 = vmatpush1.bf16.msra.mxu0 %v3737_v47  ;;  %2829 = vmatprep.mubr.msk.bf16.mxu0 %vm295_vm0, %v3392_v8  ;;  %v3394_v47 = vld [vmem:[%s4620_s2 + $0x228] ss:$16 sps:$4 sm:$0xff]  }
 0x1ba   : > { %2218 = vmatprep.subr.bf16.mxu0 %v3559_v59 }
 0x1bb   : > { %3105 = vmatpush3.bf16.msra.mxu1 %v3756_v61  ;;  %v3401_v61 = vld [vmem:[%s4620_s2 + $0x264] ss:$16 sps:$4 sm:$0xff]  }
 0x1bc   : > { %3106 = vmatprep.subr.bf16.mxu1 %v3765_v3  ;;  %v3404_v3 = vld [vmem:[%s4620_s2 + $0x26c] ss:$16 sps:$4 sm:$0xff]  }
 0x1bd   : > { %2219 = vmatpush1.bf16.msra.mxu0 %v3753_v54  ;;  %v3397_v54 = vld [vmem:[%s4620_s2 + $0x240] ss:$16 sps:$4 sm:$0xff]  }
 0x1be   : > { %1758 = vmatmul.mubr.bf16.gmra.mrb[92].mxu1 %v3391_v10  ;;  %2220 = vmatprep.subr.bf16.mxu0 %v3559_v59 }
 0x1bf   : > { %3107 = vmatpush3.bf16.msra.mxu1 %v3770_v4  ;;  %1765 = vmatprep.mubr.bf16.mxu1 %v3395_v49  ;;  %v3403_v4 = vld [vmem:[%s4620_s2 + $0x260] ss:$16 sps:$4 sm:$0xff]   ;;  %v3460_v49 = vld [vmem:[%s4620_s2 + $0x388] ss:$16 sps:$4 sm:$0xff]  }
 0x1c0   : > { %3108 = vmatprep.subr.bf16.mxu1 %v3774_v6  ;;  %1855 = vmatmul.mubr.bf16.gmra.mrb[92].mxu0 %v3394_v47  ;;  %v3407_v6 = vld [vmem:[%s4620_s2 + $0x284] ss:$16 sps:$4 sm:$0xff]  }
 0x1c1   : > { %2221 = vmatpush1.bf16.msra.mxu0 %v3761_v2  ;;  %2830 = vmatprep.mubr.msk.bf16.mxu0 %vm295_vm0, %v3398_v51  ;;  %v3400_v2 = vld [vmem:[%s4620_s2 + $0x248] ss:$16 sps:$4 sm:$0xff]  }
 0x1c2   : > { %2222 = vmatprep.subr.bf16.mxu0 %v3559_v59 }
 0x1c3   : > { %3109 = vmatpush3.bf16.msra.mxu1 %v3780_v15  ;;  %v3410_v15 = vld [vmem:[%s4620_s2 + $0x28c] ss:$16 sps:$4 sm:$0xff]  }
 0x1c4   : > { %3110 = vmatprep.subr.bf16.mxu1 %v3789_v21  ;;  %v3413_v21 = vld [vmem:[%s4620_s2 + $0x2a4] ss:$16 sps:$4 sm:$0xff]  }
 0x1c5   : > { %2223 = vmatpush1.bf16.msra.mxu0 %v3777_v9  ;;  %v3406_v9 = vld [vmem:[%s4620_s2 + $0x268] ss:$16 sps:$4 sm:$0xff]  }
 0x1c6   : > { %1766 = vmatmul.mubr.bf16.gmra.mrb[96].mxu1 %v3397_v54  ;;  %2224 = vmatprep.subr.bf16.mxu0 %v3559_v59 }
 0x1c7   : > { %3111 = vmatpush3.bf16.msra.mxu1 %v3794_v22  ;;  %1773 = vmatprep.mubr.bf16.mxu1 %v3401_v61  ;;  %v3412_v22 = vld [vmem:[%s4620_s2 + $0x288] ss:$16 sps:$4 sm:$0xff]   ;;  %v3464_v61 = vld [vmem:[%s4620_s2 + $0x3ac] ss:$16 sps:$4 sm:$0xff]  }
 0x1c8   : > { %3112 = vmatprep.subr.bf16.mxu1 %v3798_v23  ;;  %1863 = vmatmul.mubr.bf16.gmra.mrb[96].mxu0 %v3400_v2  ;;  %v3416_v23 = vld [vmem:[%s4620_s2 + $0x2ac] ss:$16 sps:$4 sm:$0xff]  }
 0x1c9   : > { %2225 = vmatpush1.bf16.msra.mxu0 %v3785_v20  ;;  %2831 = vmatprep.mubr.msk.bf16.mxu0 %vm295_vm0, %v3404_v3  ;;  %v3409_v20 = vld [vmem:[%s4620_s2 + $0x280] ss:$16 sps:$4 sm:$0xff]  }
 0x1ca   : > { %2226 = vmatprep.subr.bf16.mxu0 %v3559_v59 }
 0x1cb   : > { %3113 = vmatpush3.bf16.msra.mxu1 %v3804_v25  ;;  %v3419_v25 = vld [vmem:[%s4620_s2 + $0x2c4] ss:$16 sps:$4 sm:$0xff]  }
 0x1cc   : > { %3114 = vmatprep.subr.bf16.mxu1 %v3810_v27  ;;  %v3421_v27 = vld [vmem:[%s4620_s2 + $0x2c0] ss:$16 sps:$4 sm:$0xff]  }
 0x1cd   : > { %2227 = vmatpush1.bf16.msra.mxu0 %v3801_v24  ;;  %v3415_v24 = vld [vmem:[%s4620_s2 + $0x2a0] ss:$16 sps:$4 sm:$0xff]  }
 0x1ce   : > { %1774 = vmatmul.mubr.bf16.gmra.mrb[100].mxu1 %v3403_v4  ;;  %2228 = vmatprep.subr.bf16.mxu0 %v3559_v59 }
 0x1cf   : > { %3115 = vmatpush3.bf16.msra.mxu1 %v3814_v28  ;;  %1781 = vmatprep.mubr.bf16.mxu1 %v3407_v6  ;;  %v3425_v28 = vld [vmem:[%s4620_s2 + $0x2e4] ss:$16 sps:$4 sm:$0xff]  }
 0x1d0   : > { %3116 = vmatprep.subr.bf16.mxu1 %v3818_v29  ;;  %1871 = vmatmul.mubr.bf16.gmra.mrb[100].mxu0 %v3406_v9  ;;  %v3424_v29 = vld [vmem:[%s4620_s2 + $0x2c8] ss:$16 sps:$4 sm:$0xff]   ;;  %v3463_v9 = vld [vmem:[%s4620_s2 + $0x3a0] ss:$16 sps:$4 sm:$0xff]  }
 0x1d1   : > { %2229 = vmatpush1.bf16.msra.mxu0 %v3808_v26  ;;  %2832 = vmatprep.mubr.msk.bf16.mxu0 %vm295_vm0, %v3410_v15  ;;  %v3418_v26 = vld [vmem:[%s4620_s2 + $0x2a8] ss:$16 sps:$4 sm:$0xff]  }
 0x1d2   : > { %2230 = vmatprep.subr.bf16.mxu0 %v3559_v59 }
 0x1d3   : > { %3117 = vmatpush3.bf16.msra.mxu1 %v3824_v31  ;;  %v3427_v31 = vld [vmem:[%s4620_s2 + $0x2e0] ss:$16 sps:$4 sm:$0xff]  }
 0x1d5   : > { %2231 = vmatpush1.bf16.msra.mxu0 %v3821_v30  ;;  %v3428_v30 = vld [vmem:[%s4620_s2 + $0x2ec] ss:$16 sps:$4 sm:$0xff]  }
 0x1d6   : > { %1782 = vmatmul.mubr.bf16.gmra.mrb[104].mxu1 %v3409_v20  ;;  %2232 = vmatprep.subr.bf16.mxu0 %v3559_v59  ;;  %v3422_v59 = vld [vmem:[%s4620_s2 + $0x2cc] ss:$16 sps:$4 sm:$0xff]  }
 0x1d7   : > { %1789 = vmatprep.mubr.bf16.mxu1 %v3413_v21 }
 0x1d8   : > { %1879 = vmatmul.mubr.bf16.gmra.mrb[104].mxu0 %v3412_v22  ;;  %v3467_v22 = vld [vmem:[%s4620_s2 + $0x3c4] ss:$16 sps:$4 sm:$0xff]  }
 0x1d9   : > { %2833 = vmatprep.mubr.msk.bf16.mxu0 %vm295_vm0, %v3416_v23  ;;  %2233 = vmatpush1.bf16.msra.mxu0 %v3830_v33  ;;  %v3433_v33 = vld [vmem:[%s4620_s2 + $0x304] ss:$16 sps:$4 sm:$0xff]  }
 0x1de   : > { %1790 = vmatmul.mubr.bf16.gmra.mrb[108].mxu1 %v3415_v24 }
 0x1df   : > { %1797 = vmatprep.mubr.bf16.mxu1 %v3419_v25  ;;  %v3466_v25 = vld [vmem:[%s4620_s2 + $0x3a8] ss:$16 sps:$4 sm:$0xff]  }
 0x1e0   : > { %1887 = vmatmul.mubr.bf16.gmra.mrb[108].mxu0 %v3418_v26 }
 0x1e1   : > { %2834 = vmatprep.mubr.msk.bf16.mxu0 %vm295_vm0, %v3422_v59 }
 0x1e6   : > { %1798 = vmatmul.mubr.bf16.gmra.mrb[112].mxu1 %v3421_v27 }
 0x1e7   : > { %1805 = vmatprep.mubr.bf16.mxu1 %v3425_v28  ;;  %v3470_v28 = vld [vmem:[%s4620_s2 + $0x3cc] ss:$16 sps:$4 sm:$0xff]  }
 0x1e8   : > { %1895 = vmatmul.mubr.bf16.gmra.mrb[112].mxu0 %v3424_v29 }
 0x1e9   : > { %2835 = vmatprep.mubr.msk.bf16.mxu0 %vm295_vm0, %v3428_v30 }
 0x1ee   : > { %1806 = vmatmul.mubr.bf16.gmra.mrb[116].mxu1 %v3427_v31 }
 0x1ef   : > { %2151 = vmatprep.mubr.bf16.mxu1 %v3433_v33 }
 0x1f0   : > { %1903 = vmatmul.mubr.bf16.gmra.mrb[116].mxu0 %v3430_v11  ;;  %v3469_v11 = vld [vmem:[%s4620_s2 + $0x3c0] ss:$16 sps:$4 sm:$0xff]  }
 0x1f1   : > { %2868 = vmatprep.mubr.msk.bf16.mxu0 %vm295_vm0, %v3436_v12 }
 0x1f6   : > { %2152 = vmatmul.mubr.bf16.vlgmr.msra.gmra.mrb[120].mxu1 %v3431_v13 }
 0x1f7   : > { %2159 = vmatprep.mubr.bf16.mxu1 %v3437_v14 }
 0x1f8   : > { %2249 = vmatmul.mubr.bf16.vlgmr.msra.gmra.mrb[120].mxu0 %v3434_v16  ;;  %v3473_v16 = vld [vmem:[%s4620_s2 + $0x3e4] ss:$16 sps:$4 sm:$0xff]  }
 0x1f9   : > { %2869 = vmatprep.mubr.msk.bf16.mxu0 %vm295_vm0, %v3440_v17 }
 0x1fe   : > { %2160 = vmatmul.mubr.bf16.gmra.mrb[124].mxu1 %v3439_v18 }
 0x1ff   : > { %2167 = vmatprep.mubr.bf16.mxu1 %v3443_v19  ;;  %v3472_v19 = vld [vmem:[%s4620_s2 + $0x3c8] ss:$16 sps:$4 sm:$0xff]  }
 0x200   : > { %2257 = vmatmul.mubr.bf16.gmra.mrb[124].mxu0 %v3442_v32 }
 0x201   : > { %2870 = vmatprep.mubr.msk.bf16.mxu0 %vm295_vm0, %v3446_v34 }
 0x206   : > { %2168 = vmatmul.mubr.bf16.gmra.mrb[128].mxu1 %v3445_v35 }
 0x207   : > { %2175 = vmatprep.mubr.bf16.mxu1 %v3449_v36  ;;  %v3476_v36 = vld [vmem:[%s4620_s2 + $0x3ec] ss:$16 sps:$4 sm:$0xff]  }
 0x208   : > { %2265 = vmatmul.mubr.bf16.gmra.mrb[128].mxu0 %v3448_v37 }
 0x209   : > { %v2926_v39 = vpop.f32.mrb[24].mxu1  ;;  %2871 = vmatprep.mubr.msk.bf16.mxu0 %vm295_vm0, %v3452_v38 }
 0x20a   : > { %v2927_v40 = vpop.f32.mrb[25].mxu1 }
 0x20b   : > { %v2928_v42 = vadd.f32 %v2927_v40, %v2926_v39  ;;  %v2929_v43 = vpop.f32.mrb[26].mxu1  ;;  %v1044_v44 = vpop.f32.mrb[24].mxu0 }
 0x20c   : > { %v2930_v46 = vpop.f32.mrb[27].mxu1  ;;  %v1046_v48 = vpop.f32.mrb[25].mxu0 }
 0x20d   : > { %v2931_v52 = vadd.f32 %v2930_v46, %v2929_v43  ;;  %v4293_v53 = vadd.f32 %v2928_v42, %v1044_v44  ;;  %v1047_v55 = vpop.f32.mrb[26].mxu0  ;;  %v3478_v48 = vld [vmem:[%s4620_s2 + $0x3e8] ss:$16 sps:$4 sm:$0xff]  }
 0x20e   : > { %2176 = vmatmul.mubr.bf16.gmra.mrb[132].mxu1 %v3451_v41  ;;  %v1049_v57 = vpop.f32.mrb[27].mxu0  ;;  %v3475_v41 = vld [vmem:[%s4620_s2 + $0x3e0] ss:$16 sps:$4 sm:$0xff]  }
 0x20f   : > { %v4298_v58 = vadd.f32 %v2931_v52, %v1047_v55  ;;  %2183 = vmatprep.mubr.bf16.mxu1 %v3455_v45 }
 0x210   : > { %2273 = vmatmul.mubr.bf16.gmra.mrb[132].mxu0 %v3454_v50 }
 0x211   : > { %v2932_v60 = vpop.f32.mrb[28].mxu1  ;;  %2872 = vmatprep.mubr.msk.bf16.mxu0 %vm295_vm0, %v3458_v56 }
 0x212   : > { %v2933_v62 = vpop.f32.mrb[29].mxu1 }
 0x213   : > { %v2934_v0 = vadd.f32 %v2933_v62, %v2932_v60  ;;  %v2935_v1 = vpop.f32.mrb[30].mxu1  ;;  %v1052_v5 = vpop.f32.mrb[28].mxu0 }
 0x214   : > { %v2936_v8 = vpop.f32.mrb[31].mxu1  ;;  %v1054_v10 = vpop.f32.mrb[29].mxu0 }
 0x215   : > { %v2937_v47 = vadd.f32 %v2936_v8, %v2935_v1  ;;  %v4310_v51 = vadd.f32 %v2934_v0, %v1052_v5  ;;  %v1055_v54 = vpop.f32.mrb[30].mxu0 }
 0x216   : > { %2184 = vmatmul.mubr.bf16.gmra.mrb[136].mxu1 %v3457_v63  ;;  %v1057_v2 = vpop.f32.mrb[31].mxu0 }
 0x217   : > { %v4315_v3 = vadd.f32 %v2937_v47, %v1055_v54  ;;  %2191 = vmatprep.mubr.bf16.mxu1 %v3461_v7 }
 0x218   : > { %2281 = vmatmul.mubr.bf16.gmra.mrb[136].mxu0 %v3460_v49 }
 0x219   : > { %v2938_v4 = vpop.f32.mrb[32].mxu1  ;;  %2873 = vmatprep.mubr.msk.bf16.mxu0 %vm295_vm0, %v3464_v61 }
 0x21a   : > { %v2939_v6 = vpop.f32.mrb[33].mxu1 }
 0x21b   : > { %v2940_v15 = vadd.f32 %v2939_v6, %v2938_v4  ;;  %v2941_v20 = vpop.f32.mrb[34].mxu1  ;;  %v1060_v21 = vpop.f32.mrb[32].mxu0 }
 0x21c   : > { %v2942_v23 = vpop.f32.mrb[35].mxu1  ;;  %v1062_v24 = vpop.f32.mrb[33].mxu0 }
 0x21d   : > { %v2943_v26 = vadd.f32 %v2942_v23, %v2941_v20  ;;  %v4327_v59 = vadd.f32 %v2940_v15, %v1060_v21  ;;  %v1063_v27 = vpop.f32.mrb[34].mxu0 }
 0x21e   : > { %2192 = vmatmul.mubr.bf16.gmra.mrb[140].mxu1 %v3463_v9  ;;  %v1065_v29 = vpop.f32.mrb[35].mxu0 }
 0x21f   : > { %v4332_v30 = vadd.f32 %v2943_v26, %v1063_v27  ;;  %2199 = vmatprep.mubr.bf16.mxu1 %v3467_v22 }
 0x220   : > { %2289 = vmatmul.mubr.bf16.gmra.mrb[140].mxu0 %v3466_v25 }
 0x221   : > { %v2944_v31 = vpop.f32.mrb[36].mxu1  ;;  %2874 = vmatprep.mubr.msk.bf16.mxu0 %vm295_vm0, %v3470_v28 }
 0x222   : > { %v2945_v33 = vpop.f32.mrb[37].mxu1 }
 0x223   : > { %v2946_v12 = vadd.f32 %v2945_v33, %v2944_v31  ;;  %v2947_v13 = vpop.f32.mrb[38].mxu1  ;;  %v1068_v14 = vpop.f32.mrb[36].mxu0 }
 0x224   : > { %v2948_v17 = vpop.f32.mrb[39].mxu1  ;;  %v1070_v18 = vpop.f32.mrb[37].mxu0 }
 0x225   : > { %v2949_v32 = vadd.f32 %v2948_v17, %v2947_v13  ;;  %v4344_v34 = vadd.f32 %v2946_v12, %v1068_v14  ;;  %v1071_v35 = vpop.f32.mrb[38].mxu0 }
 0x226   : > { %2200 = vmatmul.mubr.bf16.gmra.mrb[144].mxu1 %v3469_v11  ;;  %v1073_v37 = vpop.f32.mrb[39].mxu0 }
 0x227   : > { %v4349_v38 = vadd.f32 %v2949_v32, %v1071_v35  ;;  %2207 = vmatprep.mubr.bf16.mxu1 %v3473_v16 }
 0x228   : > { %2297 = vmatmul.mubr.bf16.gmra.mrb[144].mxu0 %v3472_v19 }
 0x229   : > { %v2950_v39 = vpop.f32.mrb[40].mxu1  ;;  %2875 = vmatprep.mubr.msk.bf16.mxu0 %vm295_vm0, %v3476_v36  ;;  %vm2522_vm0 = vcmask 523264  }
 0x22a   : > { %v2951_v40 = vpop.f32.mrb[41].mxu1 }
 0x22b   : > { %v2952_v42 = vadd.f32 %v2951_v40, %v2950_v39  ;;  %v2953_v43 = vpop.f32.mrb[42].mxu1  ;;  %v1076_v44 = vpop.f32.mrb[40].mxu0 }
 0x22c   : > { %v2954_v45 = vpop.f32.mrb[43].mxu1  ;;  %v1078_v46 = vpop.f32.mrb[41].mxu0 }
 0x22d   : > { %v2955_v50 = vadd.f32 %v2954_v45, %v2953_v43  ;;  %v4358_v52 = vadd.f32 %v2952_v42, %v1076_v44  ;;  %v1079_v55 = vpop.f32.mrb[42].mxu0 }
 0x22e   : > { %2208 = vmatmul.mubr.bf16.gmra.mrb[148].mxu1 %v3475_v41  ;;  %v1081_v56 = vpop.f32.mrb[43].mxu0 }
 0x22f   : > { %v4360_v57 = vadd.f32 %v2955_v50, %v1079_v55 }
 0x230   : > { %2305 = vmatmul.mubr.bf16.gmra.mrb[148].mxu0 %v3478_v48 }
 0x231   : > { %v2956_v60 = vpop.f32.mrb[44].mxu1 }
 0x232   : > { %v2957_v62 = vpop.f32.mrb[45].mxu1 }
 0x233   : > { %v2958_v63 = vadd.f32 %v2957_v62, %v2956_v60  ;;  %v2959_v0 = vpop.f32.mrb[46].mxu1  ;;  %v1084_v1 = vpop.f32.mrb[44].mxu0 }
 0x234   : > { %v2960_v5 = vpop.f32.mrb[47].mxu1  ;;  %v1086_v7 = vpop.f32.mrb[45].mxu0 }
 0x235   : > { %v2961_v8 = vadd.f32 %v2960_v5, %v2959_v0  ;;  %v4362_v10 = vadd.f32 %v2958_v63, %v1084_v1  ;;  %v1087_v49 = vpop.f32.mrb[46].mxu0 }
 0x236   : > { %v1089_v47 = vpop.f32.mrb[47].mxu0 }
 0x237   : > { %v4364_v54 = vadd.f32 %v2961_v8, %v1087_v49 }
 0x239   : > { %v2962_v61 = vpop.f32.mrb[48].mxu1 }
 0x23a   : > { %v2963_v2 = vpop.f32.mrb[49].mxu1 }
 0x23b   : > { %v2964_v4 = vadd.f32 %v2963_v2, %v2962_v61  ;;  %v2965_v6 = vpop.f32.mrb[50].mxu1  ;;  %v1092_v9 = vpop.f32.mrb[48].mxu0 }
 0x23c   : > { %v2966_v15 = vpop.f32.mrb[51].mxu1  ;;  %v1094_v20 = vpop.f32.mrb[49].mxu0 }
 0x23d   : > { %v2967_v21 = vadd.f32 %v2966_v15, %v2965_v6  ;;  %v4366_v22 = vadd.f32 %v2964_v4, %v1092_v9  ;;  %v1095_v23 = vpop.f32.mrb[50].mxu0 }
 0x23e   : > { %v1097_v24 = vpop.f32.mrb[51].mxu0 }
 0x23f   : > { %v4368_v25 = vadd.f32 %v2967_v21, %v1095_v23 }
 0x241   : > { %v2968_v26 = vpop.f32.mrb[52].mxu1 }
 0x242   : > { %v2969_v27 = vpop.f32.mrb[53].mxu1 }
 0x243   : > { %v2970_v28 = vadd.f32 %v2969_v27, %v2968_v26  ;;  %v2971_v29 = vpop.f32.mrb[54].mxu1  ;;  %v1100_v31 = vpop.f32.mrb[52].mxu0 }
 0x244   : > { %v2972_v33 = vpop.f32.mrb[55].mxu1  ;;  %v1102_v11 = vpop.f32.mrb[53].mxu0 }
 0x245   : > { %v2973_v12 = vadd.f32 %v2972_v33, %v2971_v29  ;;  %v4370_v13 = vadd.f32 %v2970_v28, %v1100_v31  ;;  %v1103_v14 = vpop.f32.mrb[54].mxu0 }
 0x246   : > { %v1105_v16 = vpop.f32.mrb[55].mxu0 }
 0x247   : > { %v4372_v17 = vadd.f32 %v2973_v12, %v1103_v14 }
 0x249   : > { %v2990_v18 = vpop.f32.mrb[56].mxu1 }
 0x24a   : > { %v2991_v19 = vpop.f32.mrb[57].mxu1 }
 0x24b   : > { %v2992_v32 = vadd.f32 %v2991_v19, %v2990_v18  ;;  %v2993_v35 = vpop.f32.mrb[58].mxu1  ;;  %v1446_v36 = vpop.f32.mrb[56].mxu0 }
 0x24c   : > { %v2994_v37 = vpop.f32.mrb[59].mxu1  ;;  %v1448_v39 = vpop.f32.mrb[57].mxu0 }
 0x24d   : > { %v2995_v40 = vadd.f32 %v2994_v37, %v2993_v35  ;;  %v1447_v41 = vadd.f32 %v2992_v32, %v1446_v36  ;;  %v1449_v42 = vpop.f32.mrb[58].mxu0 }
 0x24e   : > { %v1451_v43 = vpop.f32.mrb[59].mxu0 }
 0x24f   : > { %v1450_v44 = vadd.f32 %v2995_v40, %v1449_v42  ;;  %2329 = vrot.lane.b32.xlu0 %v1447_v41, %s3561_s11 }
 0x251   : > { %v2996_v45 = vpop.f32.mrb[60].mxu1 }
 0x252   : > { %v2997_v46 = vpop.f32.mrb[61].mxu1 }
 0x253   : > { %v2998_v48 = vadd.f32 %v2997_v46, %v2996_v45  ;;  %v2999_v50 = vpop.f32.mrb[62].mxu1  ;;  %2331 = vrot.lane.b32.xlu0 %v1450_v44, %s3561_s11  ;;  %v1454_v55 = vpop.f32.mrb[60].mxu0 }
 0x254   : > { %v3000_v56 = vpop.f32.mrb[63].mxu1  ;;  %v1456_v60 = vpop.f32.mrb[61].mxu0 }
 0x255   : > { %v3001_v62 = vadd.f32 %v3000_v56, %v2999_v50  ;;  %v1455_v63 = vadd.f32 %v2998_v48, %v1454_v55  ;;  %v1457_v0 = vpop.f32.mrb[62].mxu0 }
 0x256   : > { %v1459_v1 = vpop.f32.mrb[63].mxu0 }
 0x257   : > { %v1458_v5 = vadd.f32 %v3001_v62, %v1457_v0  ;;  %2333 = vrot.lane.b32.xlu1 %v1455_v63, %s3561_s11 }
 0x259   : > { %v3002_v7 = vpop.f32.mrb[64].mxu1 }
 0x25a   : > { %v3003_v8 = vpop.f32.mrb[65].mxu1 }
 0x25b   : > { %v3004_v49 = vadd.f32 %v3003_v8, %v3002_v7  ;;  %v3005_v47 = vpop.f32.mrb[66].mxu1  ;;  %2335 = vrot.lane.b32.xlu1 %v1458_v5, %s3561_s11  ;;  %v1462_v61 = vpop.f32.mrb[64].mxu0 }
 0x25c   : > { %v3006_v2 = vpop.f32.mrb[67].mxu1  ;;  %v1464_v4 = vpop.f32.mrb[65].mxu0 }
 0x25d   : > { %v3007_v6 = vadd.f32 %v3006_v2, %v3005_v47  ;;  %v1463_v9 = vadd.f32 %v3004_v49, %v1462_v61  ;;  %v1465_v15 = vpop.f32.mrb[66].mxu0 }
 0x25e   : > { %v1467_v20 = vpop.f32.mrb[67].mxu0 }
 0x25f   : > { %v1466_v21 = vadd.f32 %v3007_v6, %v1465_v15  ;;  %2337 = vrot.lane.b32.xlu0 %v1463_v9, %s3561_s11 }
 0x261   : > { %v3008_v23 = vpop.f32.mrb[68].mxu1  ;;  %2339 = vrot.lane.b32.xlu1 %v1466_v21, %s3561_s11 }
 0x262   : > { %v3009_v24 = vpop.f32.mrb[69].mxu1 }
 0x263   : > { %v3010_v26 = vadd.f32 %v3009_v24, %v3008_v23  ;;  %v3011_v27 = vpop.f32.mrb[70].mxu1  ;;  %v1470_v28 = vpop.f32.mrb[68].mxu0 }
 0x264   : > { %v3012_v29 = vpop.f32.mrb[71].mxu1  ;;  %v1472_v31 = vpop.f32.mrb[69].mxu0 }
 0x265   : > { %v3013_v33 = vadd.f32 %v3012_v29, %v3011_v27  ;;  %v1471_v11 = vadd.f32 %v3010_v26, %v1470_v28  ;;  %v1473_v12 = vpop.f32.mrb[70].mxu0 }
 0x266   : > { %v1475_v14 = vpop.f32.mrb[71].mxu0 }
 0x267   : > { %v1474_v16 = vadd.f32 %v3013_v33, %v1473_v12  ;;  %2341 = vrot.lane.b32.xlu0 %v1471_v11, %s3561_s11 }
 0x269   : > { %v3014_v18 = vpop.f32.mrb[72].mxu1  ;;  %2343 = vrot.lane.b32.xlu1 %v1474_v16, %s3561_s11 }
 0x26a   : > { %v3015_v19 = vpop.f32.mrb[73].mxu1 }
 0x26b   : > { %v3016_v32 = vadd.f32 %v3015_v19, %v3014_v18  ;;  %v3017_v35 = vpop.f32.mrb[74].mxu1  ;;  %v1478_v36 = vpop.f32.mrb[72].mxu0 }
 0x26c   : > { %v3018_v37 = vpop.f32.mrb[75].mxu1  ;;  %v1480_v39 = vpop.f32.mrb[73].mxu0 }
 0x26d   : > { %v3019_v40 = vadd.f32 %v3018_v37, %v3017_v35  ;;  %v1479_v41 = vadd.f32 %v3016_v32, %v1478_v36  ;;  %v1481_v42 = vpop.f32.mrb[74].mxu0 }
 0x26e   : > { %v1483_v43 = vpop.f32.mrb[75].mxu0 }
 0x26f   : > { %v1482_v44 = vadd.f32 %v3019_v40, %v1481_v42  ;;  %2345 = vrot.lane.b32.xlu0 %v1479_v41, %s3561_s11 }
 0x271   : > { %v3020_v45 = vpop.f32.mrb[76].mxu1  ;;  %2347 = vrot.lane.b32.xlu1 %v1482_v44, %s3561_s11 }
 0x272   : > { %v3021_v46 = vpop.f32.mrb[77].mxu1 }
 0x273   : > { %v3022_v48 = vadd.f32 %v3021_v46, %v3020_v45  ;;  %v3023_v50 = vpop.f32.mrb[78].mxu1  ;;  %v1486_v55 = vpop.f32.mrb[76].mxu0 }
 0x274   : > { %v3024_v56 = vpop.f32.mrb[79].mxu1  ;;  %v1488_v60 = vpop.f32.mrb[77].mxu0 }
 0x275   : > { %v3025_v62 = vadd.f32 %v3024_v56, %v3023_v50  ;;  %v1487_v63 = vadd.f32 %v3022_v48, %v1486_v55  ;;  %v1489_v0 = vpop.f32.mrb[78].mxu0 }
 0x276   : > { %v1491_v1 = vpop.f32.mrb[79].mxu0 }
 0x277   : > { %v1490_v5 = vadd.f32 %v3025_v62, %v1489_v0  ;;  %2349 = vrot.lane.b32.xlu0 %v1487_v63, %s3561_s11 }
 0x279   : > { %v3026_v7 = vpop.f32.mrb[80].mxu1  ;;  %2351 = vrot.lane.b32.xlu1 %v1490_v5, %s3561_s11 }
 0x27a   : > { %v3027_v8 = vpop.f32.mrb[81].mxu1 }
 0x27b   : > { %v3028_v49 = vadd.f32 %v3027_v8, %v3026_v7  ;;  %v3029_v47 = vpop.f32.mrb[82].mxu1  ;;  %v1494_v61 = vpop.f32.mrb[80].mxu0 }
 0x27c   : > { %v3030_v2 = vpop.f32.mrb[83].mxu1  ;;  %v1496_v4 = vpop.f32.mrb[81].mxu0 }
 0x27d   : > { %v3031_v6 = vadd.f32 %v3030_v2, %v3029_v47  ;;  %v1495_v9 = vadd.f32 %v3028_v49, %v1494_v61  ;;  %v1497_v15 = vpop.f32.mrb[82].mxu0 }
 0x27e   : > { %v1499_v20 = vpop.f32.mrb[83].mxu0 }
 0x27f   : > { %v1498_v21 = vadd.f32 %v3031_v6, %v1497_v15  ;;  %2353 = vrot.lane.b32.xlu0 %v1495_v9, %s3561_s11 }
 0x281   : > { %v3032_v23 = vpop.f32.mrb[84].mxu1  ;;  %2355 = vrot.lane.b32.xlu1 %v1498_v21, %s3561_s11 }
 0x282   : > { %v3033_v24 = vpop.f32.mrb[85].mxu1 }
 0x283   : > { %v3034_v26 = vadd.f32 %v3033_v24, %v3032_v23  ;;  %v3035_v27 = vpop.f32.mrb[86].mxu1  ;;  %v1502_v28 = vpop.f32.mrb[84].mxu0 }
 0x284   : > { %v3036_v29 = vpop.f32.mrb[87].mxu1  ;;  %v1504_v31 = vpop.f32.mrb[85].mxu0 }
 0x285   : > { %v3037_v33 = vadd.f32 %v3036_v29, %v3035_v27  ;;  %v1503_v11 = vadd.f32 %v3034_v26, %v1502_v28  ;;  %v1505_v12 = vpop.f32.mrb[86].mxu0 }
 0x286   : > { %v1507_v14 = vpop.f32.mrb[87].mxu0 }
 0x287   : > { %v1506_v16 = vadd.f32 %v3037_v33, %v1505_v12  ;;  %2357 = vrot.lane.b32.xlu0 %v1503_v11, %s3561_s11 }
 0x289   : > { %v3054_v18 = vpop.f32.mrb[88].mxu1  ;;  %2359 = vrot.lane.b32.xlu1 %v1506_v16, %s3561_s11 }
 0x28a   : > { %v3055_v19 = vpop.f32.mrb[89].mxu1 }
 0x28b   : > { %v3056_v32 = vadd.f32 %v3055_v19, %v3054_v18  ;;  %v3057_v35 = vpop.f32.mrb[90].mxu1  ;;  %v1848_v36 = vpop.f32.mrb[88].mxu0 }
 0x28c   : > { %v3058_v37 = vpop.f32.mrb[91].mxu1  ;;  %v1850_v39 = vpop.f32.mrb[89].mxu0 }
 0x28d   : > { %v3059_v40 = vadd.f32 %v3058_v37, %v3057_v35  ;;  %v1849_v41 = vadd.f32 %v3056_v32, %v1848_v36  ;;  %v1851_v42 = vpop.f32.mrb[90].mxu0 }
 0x28e   : > { %v1853_v43 = vpop.f32.mrb[91].mxu0 }
 0x28f   : > { %v1852_v44 = vadd.f32 %v3059_v40, %v1851_v42  ;;  %2393 = vrot.lane.b32.xlu0 %v1849_v41, %s3562_s18 }
 0x291   : > { %v3060_v45 = vpop.f32.mrb[92].mxu1  ;;  %2395 = vrot.lane.b32.xlu1 %v1852_v44, %s3562_s18 }
 0x292   : > { %v3061_v46 = vpop.f32.mrb[93].mxu1 }
 0x293   : > { %v3062_v48 = vadd.f32 %v3061_v46, %v3060_v45  ;;  %v3063_v50 = vpop.f32.mrb[94].mxu1  ;;  %v1856_v55 = vpop.f32.mrb[92].mxu0 }
 0x294   : > { %v3064_v56 = vpop.f32.mrb[95].mxu1  ;;  %v1858_v60 = vpop.f32.mrb[93].mxu0 }
 0x295   : > { %v3065_v62 = vadd.f32 %v3064_v56, %v3063_v50  ;;  %v1857_v63 = vadd.f32 %v3062_v48, %v1856_v55  ;;  %v1859_v0 = vpop.f32.mrb[94].mxu0 }
 0x296   : > { %v1861_v1 = vpop.f32.mrb[95].mxu0 }
 0x297   : > { %v1860_v5 = vadd.f32 %v3065_v62, %v1859_v0  ;;  %2397 = vrot.lane.b32.xlu0 %v1857_v63, %s3562_s18 }
 0x299   : > { %v3066_v7 = vpop.f32.mrb[96].mxu1  ;;  %2399 = vrot.lane.b32.xlu1 %v1860_v5, %s3562_s18 }
 0x29a   : > { %v3067_v8 = vpop.f32.mrb[97].mxu1 }
 0x29b   : > { %v3068_v49 = vadd.f32 %v3067_v8, %v3066_v7  ;;  %v3069_v47 = vpop.f32.mrb[98].mxu1  ;;  %v1864_v61 = vpop.f32.mrb[96].mxu0 }
 0x29c   : > { %v3070_v2 = vpop.f32.mrb[99].mxu1  ;;  %v1866_v4 = vpop.f32.mrb[97].mxu0 }
 0x29d   : > { %v3071_v6 = vadd.f32 %v3070_v2, %v3069_v47  ;;  %v1865_v9 = vadd.f32 %v3068_v49, %v1864_v61  ;;  %v1867_v15 = vpop.f32.mrb[98].mxu0 }
 0x29e   : > { %v1869_v20 = vpop.f32.mrb[99].mxu0 }
 0x29f   : > { %v1868_v21 = vadd.f32 %v3071_v6, %v1867_v15  ;;  %2401 = vrot.lane.b32.xlu0 %v1865_v9, %s3562_s18 }
 0x2a1   : > { %v3072_v23 = vpop.f32.mrb[100].mxu1  ;;  %2403 = vrot.lane.b32.xlu1 %v1868_v21, %s3562_s18 }
 0x2a2   : > { %v3073_v24 = vpop.f32.mrb[101].mxu1 }
 0x2a3   : > { %v3074_v26 = vadd.f32 %v3073_v24, %v3072_v23  ;;  %v3075_v27 = vpop.f32.mrb[102].mxu1  ;;  %v1872_v28 = vpop.f32.mrb[100].mxu0 }
 0x2a4   : > { %v3076_v29 = vpop.f32.mrb[103].mxu1  ;;  %v1874_v31 = vpop.f32.mrb[101].mxu0 }
 0x2a5   : > { %v3077_v33 = vadd.f32 %v3076_v29, %v3075_v27  ;;  %v1873_v11 = vadd.f32 %v3074_v26, %v1872_v28  ;;  %v1875_v12 = vpop.f32.mrb[102].mxu0 }
 0x2a6   : > { %v1877_v14 = vpop.f32.mrb[103].mxu0 }
 0x2a7   : > { %v1876_v16 = vadd.f32 %v3077_v33, %v1875_v12  ;;  %2405 = vrot.lane.b32.xlu0 %v1873_v11, %s3562_s18 }
 0x2a9   : > { %v3078_v18 = vpop.f32.mrb[104].mxu1  ;;  %2407 = vrot.lane.b32.xlu1 %v1876_v16, %s3562_s18 }
 0x2aa   : > { %v3079_v19 = vpop.f32.mrb[105].mxu1 }
 0x2ab   : > { %v3080_v32 = vadd.f32 %v3079_v19, %v3078_v18  ;;  %v3081_v35 = vpop.f32.mrb[106].mxu1  ;;  %v1880_v36 = vpop.f32.mrb[104].mxu0 }
 0x2ac   : > { %v3082_v37 = vpop.f32.mrb[107].mxu1  ;;  %v1882_v39 = vpop.f32.mrb[105].mxu0 }
 0x2ad   : > { %v3083_v40 = vadd.f32 %v3082_v37, %v3081_v35  ;;  %v1881_v41 = vadd.f32 %v3080_v32, %v1880_v36  ;;  %v1883_v42 = vpop.f32.mrb[106].mxu0 }
 0x2ae   : > { %v1885_v43 = vpop.f32.mrb[107].mxu0 }
 0x2af   : > { %v1884_v44 = vadd.f32 %v3083_v40, %v1883_v42  ;;  %2409 = vrot.lane.b32.xlu0 %v1881_v41, %s3562_s18 }
 0x2b1   : > { %v3084_v45 = vpop.f32.mrb[108].mxu1  ;;  %2411 = vrot.lane.b32.xlu1 %v1884_v44, %s3562_s18 }
 0x2b2   : > { %v3085_v46 = vpop.f32.mrb[109].mxu1 }
 0x2b3   : > { %v3086_v48 = vadd.f32 %v3085_v46, %v3084_v45  ;;  %v3087_v50 = vpop.f32.mrb[110].mxu1  ;;  %v1888_v55 = vpop.f32.mrb[108].mxu0 }
 0x2b4   : > { %v3088_v56 = vpop.f32.mrb[111].mxu1  ;;  %v1890_v60 = vpop.f32.mrb[109].mxu0 }
 0x2b5   : > { %v3089_v62 = vadd.f32 %v3088_v56, %v3087_v50  ;;  %v1889_v63 = vadd.f32 %v3086_v48, %v1888_v55  ;;  %v1891_v0 = vpop.f32.mrb[110].mxu0 }
 0x2b6   : > { %v1893_v1 = vpop.f32.mrb[111].mxu0 }
 0x2b7   : > { %v1892_v5 = vadd.f32 %v3089_v62, %v1891_v0  ;;  %2413 = vrot.lane.b32.xlu0 %v1889_v63, %s3562_s18 }
 0x2b9   : > { %v3090_v7 = vpop.f32.mrb[112].mxu1  ;;  %2415 = vrot.lane.b32.xlu1 %v1892_v5, %s3562_s18 }
 0x2ba   : > { %v3091_v8 = vpop.f32.mrb[113].mxu1 }
 0x2bb   : > { %v3092_v49 = vadd.f32 %v3091_v8, %v3090_v7  ;;  %v3093_v47 = vpop.f32.mrb[114].mxu1  ;;  %v1896_v61 = vpop.f32.mrb[112].mxu0 }
 0x2bc   : > { %v3094_v2 = vpop.f32.mrb[115].mxu1  ;;  %v1898_v4 = vpop.f32.mrb[113].mxu0 }
 0x2bd   : > { %v3095_v6 = vadd.f32 %v3094_v2, %v3093_v47  ;;  %v1897_v9 = vadd.f32 %v3092_v49, %v1896_v61  ;;  %v1899_v15 = vpop.f32.mrb[114].mxu0 }
 0x2be   : > { %v1901_v20 = vpop.f32.mrb[115].mxu0 }
 0x2bf   : > { %v1900_v21 = vadd.f32 %v3095_v6, %v1899_v15  ;;  %2417 = vrot.lane.b32.xlu0 %v1897_v9, %s3562_s18 }
 0x2c1   : > { %v3096_v23 = vpop.f32.mrb[116].mxu1  ;;  %2419 = vrot.lane.b32.xlu1 %v1900_v21, %s3562_s18  ;;  %v4404_v24 = vpop.permute.xlu0 %2329 }
 0x2c2   : > { %v3097_v26 = vpop.f32.mrb[117].mxu1 }
 0x2c3   : > { %v3098_v27 = vadd.f32 %v3097_v26, %v3096_v23  ;;  %v3099_v28 = vpop.f32.mrb[118].mxu1  ;;  %v1904_v29 = vpop.f32.mrb[116].mxu0 }
 0x2c4   : > { %v3100_v31 = vpop.f32.mrb[119].mxu1  ;;  %v1906_v33 = vpop.f32.mrb[117].mxu0 }
 0x2c5   : > { %v3101_v11 = vadd.f32 %v3100_v31, %v3099_v28  ;;  %v1905_v12 = vadd.f32 %v3098_v27, %v1904_v29  ;;  %v1907_v14 = vpop.f32.mrb[118].mxu0  ;;  %v4408_v35 = vpop.permute.xlu0 %2331 }
 0x2c6   : > { %v1909_v16 = vpop.f32.mrb[119].mxu0 }
 0x2c7   : > { %v1908_v18 = vadd.f32 %v3101_v11, %v1907_v14  ;;  %2421 = vrot.lane.b32.xlu0 %v1905_v12, %s3562_s18 }
 0x2c9   : > { %v3118_v19 = vpop.f32.mrb[120].mxu1  ;;  %2423 = vrot.lane.b32.xlu1 %v1908_v18, %s3562_s18  ;;  %v2334_v32 = vpop.permute.xlu1 %2333 }
 0x2ca   : > { %v4412_v36 = vsel %vm425_vm2, %v4310_v51, %v2334_v32  ;;  %v3119_v37 = vpop.f32.mrb[121].mxu1 }
 0x2cb   : > { %v3120_v39 = vadd.f32 %v3119_v37, %v3118_v19  ;;  %v3121_v40 = vpop.f32.mrb[122].mxu1  ;;  %v2250_v41 = vpop.f32.mrb[120].mxu0 }
 0x2cc   : > { %v3122_v42 = vpop.f32.mrb[123].mxu1  ;;  %v2252_v43 = vpop.f32.mrb[121].mxu0 }
 0x2cd   : > { %v3123_v44 = vadd.f32 %v3122_v42, %v3121_v40  ;;  %v2251_v45 = vadd.f32 %v3120_v39, %v2250_v41  ;;  %v2336_v46 = vpop.permute.xlu1 %2335  ;;  %v2253_v48 = vpop.f32.mrb[122].mxu0 }
 0x2ce   : > { %v4416_v50 = vsel %vm425_vm2, %v4315_v3, %v2336_v46  ;;  %v2255_v55 = vpop.f32.mrb[123].mxu0 }
 0x2cf   : > { %v2254_v56 = vadd.f32 %v3123_v44, %v2253_v48  ;;  %2457 = vrot.lane.b32.xlu0 %v2251_v45, %s3563_s19 }
 0x2d1   : > { %v3124_v51 = vpop.f32.mrb[124].mxu1  ;;  %2459 = vrot.lane.b32.xlu1 %v2254_v56, %s3563_s19  ;;  %v2338_v60 = vpop.permute.xlu0 %2337 }
 0x2d2   : > { %v4422_v62 = vsel %vm425_vm2, %v4327_v59, %v2338_v60  ;;  %v3125_v63 = vpop.f32.mrb[125].mxu1 }
 0x2d3   : > { %v3126_v0 = vadd.f32 %v3125_v63, %v3124_v51  ;;  %v3127_v1 = vpop.f32.mrb[126].mxu1  ;;  %v2340_v5 = vpop.permute.xlu1 %2339 }
 0x2d4   : > { %v4426_v3 = vsel %vm425_vm2, %v4332_v30, %v2340_v5  ;;  %v3128_v7 = vpop.f32.mrb[127].mxu1  ;;  %v2258_v8 = vpop.f32.mrb[124].mxu0 }
 0x2d5   : > { %v3129_v49 = vadd.f32 %v3128_v7, %v3127_v1  ;;  %v2259_v47 = vadd.f32 %v3126_v0, %v2258_v8  ;;  %v2260_v61 = vpop.f32.mrb[125].mxu0 }
 0x2d6   : > { %v2261_v2 = vpop.f32.mrb[126].mxu0 }
 0x2d7   : > { %v2262_v4 = vadd.f32 %v3129_v49, %v2261_v2  ;;  %v2263_v6 = vpop.f32.mrb[127].mxu0  ;;  %2461 = vrot.lane.b32.xlu0 %v2259_v47, %s3563_s19 }
 0x2d9   : > { %v3130_v59 = vpop.f32.mrb[128].mxu1  ;;  %2463 = vrot.lane.b32.xlu1 %v2262_v4, %s3563_s19  ;;  %v2342_v9 = vpop.permute.xlu0 %2341 }
 0x2da   : > { %v4432_v15 = vsel %vm425_vm2, %v4344_v34, %v2342_v9  ;;  %v3131_v30 = vpop.f32.mrb[129].mxu1 }
 0x2db   : > { %v3132_v20 = vadd.f32 %v3131_v30, %v3130_v59  ;;  %v3133_v21 = vpop.f32.mrb[130].mxu1  ;;  %v2344_v23 = vpop.permute.xlu1 %2343 }
 0x2dc   : > { %v4436_v26 = vsel %vm425_vm2, %v4349_v38, %v2344_v23  ;;  %v3134_v27 = vpop.f32.mrb[131].mxu1  ;;  %v2266_v28 = vpop.f32.mrb[128].mxu0 }
 0x2dd   : > { %v3135_v29 = vadd.f32 %v3134_v27, %v3133_v21  ;;  %v2267_v31 = vadd.f32 %v3132_v20, %v2266_v28  ;;  %v2268_v33 = vpop.f32.mrb[129].mxu0 }
 0x2de   : > { %v2269_v11 = vpop.f32.mrb[130].mxu0 }
 0x2df   : > { %v2270_v12 = vadd.f32 %v3135_v29, %v2269_v11  ;;  %v2271_v14 = vpop.f32.mrb[131].mxu0  ;;  %2465 = vrot.lane.b32.xlu0 %v2267_v31, %s3563_s19 }
 0x2e1   : > { %v3136_v34 = vpop.f32.mrb[132].mxu1  ;;  %2467 = vrot.lane.b32.xlu1 %v2270_v12, %s3563_s19  ;;  %v2346_v16 = vpop.permute.xlu0 %2345 }
 0x2e2   : > { %v4442_v18 = vsel %vm425_vm2, %v4358_v52, %v2346_v16  ;;  %v3137_v38 = vpop.f32.mrb[133].mxu1 }
 0x2e3   : > { %v3138_v19 = vadd.f32 %v3137_v38, %v3136_v34  ;;  %v3139_v32 = vpop.f32.mrb[134].mxu1  ;;  %v2348_v37 = vpop.permute.xlu1 %2347 }
 0x2e4   : > { %v4446_v39 = vsel %vm425_vm2, %v4360_v57, %v2348_v37  ;;  %v3140_v40 = vpop.f32.mrb[135].mxu1  ;;  %v2274_v41 = vpop.f32.mrb[132].mxu0 }
 0x2e5   : > { %v3141_v42 = vadd.f32 %v3140_v40, %v3139_v32  ;;  %v2275_v43 = vadd.f32 %v3138_v19, %v2274_v41  ;;  %v2276_v44 = vpop.f32.mrb[133].mxu0 }
 0x2e6   : > { %v2277_v45 = vpop.f32.mrb[134].mxu0 }
 0x2e7   : > { %v2278_v46 = vadd.f32 %v3141_v42, %v2277_v45  ;;  %v2279_v48 = vpop.f32.mrb[135].mxu0  ;;  %2469 = vrot.lane.b32.xlu0 %v2275_v43, %s3563_s19 }
 0x2e9   : > { %v3142_v52 = vpop.f32.mrb[136].mxu1  ;;  %2471 = vrot.lane.b32.xlu1 %v2278_v46, %s3563_s19  ;;  %v2350_v55 = vpop.permute.xlu0 %2349 }
 0x2ea   : > { %v4452_v56 = vsel %vm425_vm2, %v4362_v10, %v2350_v55  ;;  %v3143_v57 = vpop.f32.mrb[137].mxu1 }
 0x2eb   : > { %v3144_v51 = vadd.f32 %v3143_v57, %v3142_v52  ;;  %v3145_v60 = vpop.f32.mrb[138].mxu1  ;;  %v2352_v63 = vpop.permute.xlu1 %2351 }
 0x2ec   : > { %v4456_v0 = vsel %vm425_vm2, %v4364_v54, %v2352_v63  ;;  %v3146_v1 = vpop.f32.mrb[139].mxu1  ;;  %v2282_v5 = vpop.f32.mrb[136].mxu0 }
 0x2ed   : > { %v3147_v7 = vadd.f32 %v3146_v1, %v3145_v60  ;;  %v2283_v8 = vadd.f32 %v3144_v51, %v2282_v5  ;;  %v2284_v49 = vpop.f32.mrb[137].mxu0 }
 0x2ee   : > { %v2285_v47 = vpop.f32.mrb[138].mxu0 }
 0x2ef   : > { %v2286_v61 = vadd.f32 %v3147_v7, %v2285_v47  ;;  %v2287_v2 = vpop.f32.mrb[139].mxu0  ;;  %2473 = vrot.lane.b32.xlu0 %v2283_v8, %s3563_s19 }
 0x2f1   : > { %v3148_v10 = vpop.f32.mrb[140].mxu1  ;;  %2475 = vrot.lane.b32.xlu1 %v2286_v61, %s3563_s19  ;;  %v2354_v4 = vpop.permute.xlu0 %2353 }
 0x2f2   : > { %v4462_v6 = vsel %vm425_vm2, %v4366_v22, %v2354_v4  ;;  %v3149_v54 = vpop.f32.mrb[141].mxu1 }
 0x2f3   : > { %v3150_v59 = vadd.f32 %v3149_v54, %v3148_v10  ;;  %v3151_v9 = vpop.f32.mrb[142].mxu1  ;;  %v2356_v30 = vpop.permute.xlu1 %2355 }
 0x2f4   : > { %v4466_v20 = vsel %vm425_vm2, %v4368_v25, %v2356_v30  ;;  %v3152_v21 = vpop.f32.mrb[143].mxu1  ;;  %v2290_v23 = vpop.f32.mrb[140].mxu0 }
 0x2f5   : > { %v3153_v27 = vadd.f32 %v3152_v21, %v3151_v9  ;;  %v2291_v28 = vadd.f32 %v3150_v59, %v2290_v23  ;;  %v2292_v29 = vpop.f32.mrb[141].mxu0 }
 0x2f6   : > { %v2293_v31 = vpop.f32.mrb[142].mxu0  ;;  %v2506_v29 = vsel %vm425_vm2, %v4293_v53, %v4404_v24 }
 0x2f7   : > { %v2294_v33 = vadd.f32 %v3153_v27, %v2293_v31  ;;  %v2295_v11 = vpop.f32.mrb[143].mxu0  ;;  %2477 = vrot.lane.b32.xlu0 %v2291_v28, %s3563_s19 }
 0x2f8   : > { %v2507_v11 = vsel %vm425_vm2, %v4298_v58, %v4408_v35 }
 0x2f9   : > { %v3154_v22 = vpop.f32.mrb[144].mxu1  ;;  %2479 = vrot.lane.b32.xlu1 %v2294_v33, %s3563_s19  ;;  %v2358_v12 = vpop.permute.xlu0 %2357 }
 0x2fa   : > { %v4472_v14 = vsel %vm425_vm2, %v4370_v13, %v2358_v12  ;;  %v3155_v25 = vpop.f32.mrb[145].mxu1 }
 0x2fb   : > { %v3156_v34 = vadd.f32 %v3155_v25, %v3154_v22  ;;  %v3157_v16 = vpop.f32.mrb[146].mxu1  ;;  %v2360_v38 = vpop.permute.xlu1 %2359 }
 0x2fc   : > { %v4476_v19 = vsel %vm425_vm2, %v4372_v17, %v2360_v38  ;;  %v3158_v32 = vpop.f32.mrb[147].mxu1  ;;  %v2298_v37 = vpop.f32.mrb[144].mxu0 }
 0x2fd   : > { %v3159_v40 = vadd.f32 %v3158_v32, %v3157_v16  ;;  %v2299_v41 = vadd.f32 %v3156_v34, %v2298_v37  ;;  %v2300_v42 = vpop.f32.mrb[145].mxu0 }
 0x2fe   : > { %v2301_v43 = vpop.f32.mrb[146].mxu0 }
 0x2ff   : > { %v2302_v44 = vadd.f32 %v3159_v40, %v2301_v43  ;;  %v2303_v45 = vpop.f32.mrb[147].mxu0  ;;  %2481 = vrot.lane.b32.xlu0 %v2299_v41, %s3563_s19 }
 0x301   : > { %v3160_v13 = vpop.f32.mrb[148].mxu1  ;;  %2483 = vrot.lane.b32.xlu1 %v2302_v44, %s3563_s19  ;;  %v2394_v7 = vpop.permute.xlu0 %2393 }
 0x302   : > { %v3161_v46 = vpop.f32.mrb[149].mxu1  ;;  %v2523_v31 = vsel %vm2522_vm0, %v2506_v29, %v2394_v7 }
 0x303   : > { %v3162_v48 = vadd.f32 %v3161_v46, %v3160_v13  ;;  %v3163_v52 = vpop.f32.mrb[150].mxu1  ;;  %v2306_v57 = vpop.f32.mrb[148].mxu0 }
 0x304   : > { %v3164_v55 = vpop.f32.mrb[151].mxu1  ;;  %v2308_v60 = vpop.f32.mrb[149].mxu0 }
 0x305   : > { %v3165_v17 = vadd.f32 %v3164_v55, %v3163_v52  ;;  %v2307_v51 = vadd.f32 %v3162_v48, %v2306_v57  ;;  %v2309_v63 = vpop.f32.mrb[150].mxu0  ;;  %v2396_v8 = vpop.permute.xlu1 %2395 }
 0x306   : > { %v2311_v5 = vpop.f32.mrb[151].mxu0  ;;  %v2524_v12 = vsel %vm2522_vm0, %v2507_v11, %v2396_v8 }
 0x307   : > { %v2310_v1 = vadd.f32 %v3165_v17, %v2309_v63  ;;  %2485 = vrot.lane.b32.xlu0 %v2307_v51, %s3563_s19 }
 0x309   : > { %2487 = vrot.lane.b32.xlu1 %v2310_v1, %s3563_s19  ;;  %v2398_v49 = vpop.permute.xlu0 %2397 }
 0x30a   : > { %v2525_v58 = vsel %vm2522_vm0, %v4412_v36, %v2398_v49 }
 0x30b   : > { %v2400_v47 = vpop.permute.xlu1 %2399 }
 0x30c   : > { %v2526_v34 = vsel %vm2522_vm0, %v4416_v50, %v2400_v47 }
 0x311   : > { %v2402_v61 = vpop.permute.xlu0 %2401 }
 0x312   : > { %v2527_v32 = vsel %vm2522_vm0, %v4422_v62, %v2402_v61 }
 0x313   : > { %v2404_v2 = vpop.permute.xlu1 %2403 }
 0x314   : > { %v2528_v36 = vsel %vm2522_vm0, %v4426_v3, %v2404_v2 }
 0x319   : > { %v2406_v10 = vpop.permute.xlu0 %2405 }
 0x31a   : > { %v2529_v42 = vsel %vm2522_vm0, %v4432_v15, %v2406_v10 }
 0x31b   : > { %v2408_v4 = vpop.permute.xlu1 %2407 }
 0x31c   : > { %v2530_v62 = vsel %vm2522_vm0, %v4436_v26, %v2408_v4 }
 0x321   : > { %v2410_v54 = vpop.permute.xlu0 %2409 }
 0x322   : > { %v2531_v13 = vsel %vm2522_vm0, %v4442_v18, %v2410_v54 }
 0x323   : > { %v2412_v59 = vpop.permute.xlu1 %2411 }
 0x324   : > { %v2532_v15 = vsel %vm2522_vm0, %v4446_v39, %v2412_v59 }
 0x329   : > { %v2414_v9 = vpop.permute.xlu0 %2413 }
 0x32a   : > { %v2533_v55 = vsel %vm2522_vm0, %v4452_v56, %v2414_v9 }
 0x32b   : > { %v2416_v30 = vpop.permute.xlu1 %2415 }
 0x32c   : > { %v2534_v17 = vsel %vm2522_vm0, %v4456_v0, %v2416_v30 }
 0x331   : > { %v2418_v21 = vpop.permute.xlu0 %2417 }
 0x332   : > { %v2535_v60 = vsel %vm2522_vm0, %v4462_v6, %v2418_v21 }
 0x333   : > { %v2420_v23 = vpop.permute.xlu1 %2419 }
 0x334   : > { %v2536_v1 = vsel %vm2522_vm0, %v4466_v20, %v2420_v23 }
 0x339   : > { %v4483_v27 = vpop.permute.xlu0 %2421 }
 0x33a   : > { %v2537_v6 = vsel %vm2522_vm0, %v4472_v14, %v4483_v27 }
 0x33b   : > { %v4487_v28 = vpop.permute.xlu1 %2423 }
 0x33c   : > { %v2538_v20 = vsel %vm2522_vm0, %v4476_v19, %v4487_v28 }
 0x341   : > { %v2458_v33 = vpop.permute.xlu0 %2457 }
 0x342   : > { %v2540_v22 = vsel %vm2539_vm3, %v2523_v31, %v2458_v33 }
 0x343   : > { %2556 = vst [vmem:[%s4498_s26] sm:$0xff] %v2540_v22  ;;  %v2460_v53 = vpop.permute.xlu1 %2459 }
 0x344   : > { %v2541_v24 = vsel %vm2539_vm3, %v2524_v12, %v2460_v53 }
 0x345   : > { %2557 = vst [vmem:[%s4498_s26 + $0x8] sm:$0xff] %v2541_v24 }
 0x349   : > { %v2462_v35 = vpop.permute.xlu0 %2461 }
 0x34a   : > { %v2542_v25 = vsel %vm2539_vm3, %v2525_v58, %v2462_v35 }
 0x34b   : > { %2558 = vst [vmem:[%s4498_s26 + $0x10] sm:$0xff] %v2542_v25  ;;  %v2464_v16 = vpop.permute.xlu1 %2463 }
 0x34c   : > { %v2543_v38 = vsel %vm2539_vm3, %v2526_v34, %v2464_v16 }
 0x34d   : > { %2559 = vst [vmem:[%s4498_s26 + $0x18] sm:$0xff] %v2543_v38 }
 0x351   : > { %v2466_v37 = vpop.permute.xlu0 %2465 }
 0x352   : > { %v2544_v40 = vsel %vm2539_vm3, %v2527_v32, %v2466_v37 }
 0x353   : > { %2560 = vst [vmem:[%s4498_s26 + $0x20] sm:$0xff] %v2544_v40  ;;  %v2468_v41 = vpop.permute.xlu1 %2467 }
 0x354   : > { %v2545_v50 = vsel %vm2539_vm3, %v2528_v36, %v2468_v41 }
 0x355   : > { %2561 = vst [vmem:[%s4498_s26 + $0x28] sm:$0xff] %v2545_v50 }
 0x359   : > { %v2470_v43 = vpop.permute.xlu0 %2469 }
 0x35a   : > { %v2546_v44 = vsel %vm2539_vm3, %v2529_v42, %v2470_v43 }
 0x35b   : > { %2562 = vst [vmem:[%s4498_s26 + $0x30] sm:$0xff] %v2546_v44  ;;  %v2472_v45 = vpop.permute.xlu1 %2471 }
 0x35c   : > { %v2547_v3 = vsel %vm2539_vm3, %v2530_v62, %v2472_v45 }
 0x35d   : > { %2563 = vst [vmem:[%s4498_s26 + $0x38] sm:$0xff] %v2547_v3 }
 0x361   : > { %v2474_v46 = vpop.permute.xlu0 %2473 }
 0x362   : > { %v2548_v48 = vsel %vm2539_vm3, %v2531_v13, %v2474_v46 }
 0x363   : > { %2564 = vst [vmem:[%s4498_s26 + $0x40] sm:$0xff] %v2548_v48  ;;  %v2476_v52 = vpop.permute.xlu1 %2475 }
 0x364   : > { %v2549_v26 = vsel %vm2539_vm3, %v2532_v15, %v2476_v52 }
 0x365   : > { %2565 = vst [vmem:[%s4498_s26 + $0x48] sm:$0xff] %v2549_v26 }
 0x369   : > { %v2478_v57 = vpop.permute.xlu0 %2477 }
 0x36a   : > { %v2550_v18 = vsel %vm2539_vm3, %v2533_v55, %v2478_v57 }
 0x36b   : > { %2566 = vst [vmem:[%s4498_s26 + $0x50] sm:$0xff] %v2550_v18  ;;  %v2480_v39 = vpop.permute.xlu1 %2479 }
 0x36c   : > { %v2551_v51 = vsel %vm2539_vm3, %v2534_v17, %v2480_v39 }
 0x36d   : > { %2567 = vst [vmem:[%s4498_s26 + $0x58] sm:$0xff] %v2551_v51 }
 0x371   : > { %v2482_v63 = vpop.permute.xlu0 %2481 }
 0x372   : > { %v2552_v56 = vsel %vm2539_vm3, %v2535_v60, %v2482_v63 }
 0x373   : > { %2568 = vst [vmem:[%s4498_s26 + $0x60] sm:$0xff] %v2552_v56  ;;  %v2484_v5 = vpop.permute.xlu1 %2483 }
 0x374   : > { %v2553_v0 = vsel %vm2539_vm3, %v2536_v1, %v2484_v5 }
 0x375   : > { %2569 = vst [vmem:[%s4498_s26 + $0x68] sm:$0xff] %v2553_v0 }
 0x379   : > { %v2486_v7 = vpop.permute.xlu0 %2485 }
 0x37a   : > { %v2554_v8 = vsel %vm2539_vm3, %v2537_v6, %v2486_v7 }
 0x37b   : > { %2570 = vst [vmem:[%s4498_s26 + $0x70] sm:$0xff] %v2554_v8  ;;  %v2488_v49 = vpop.permute.xlu1 %2487 }
 0x37c   : > { %v2555_v14 = vsel %vm2539_vm3, %v2538_v20, %v2488_v49 }
 0x37d   : > { %2571 = vst [vmem:[%s4498_s26 + $0x78] sm:$0xff] %v2555_v14 }
 0x37e   : > { %3492 = shalt.err (!%p3489_p5)
}
 0x37f   : > { %s3493_s9 = scalar_lea.hbm %s4560_s4, 2048  ;;  %s3497_s18 = scalar_lea.hbm %s4621_s3, 4096 }
 0x380   : > { %p3494_p6 = scmp.ne.s32.totalorder %s4560_s4, %s3493_s9  ;;  %p3498_p10 = scmp.lt.u32.totalorder %s4560_s4, %s4621_s3 }
 0x381   : > { %p3499_p11 = scmp.lt.u32.totalorder %s3497_s18, %s3493_s9  ;;  %p3501_p13 = scmp.lt.u32.totalorder %s3493_s9, %s4560_s4 }
 0x382   : > { %p3495_p7 = pnand %p3494_p6, %p3627_p4 }
 0x383   : > { %p3500_p12 = por %p3499_p11, %p3498_p10 }
 0x384   : > { %p3496_p9 = pneg %p3495_p7 }
 0x385   : > { %p3502_p0 = por %p3501_p13, %p3500_p12 }
 0x387   : > { %p3503_p1 = pnand %p3502_p0, %p3496_p9 }
 0x389   : > { %3506 = shalt.err (!%p3503_p1)
}
 0x38a   : > { %s3565_s23 = smov 128   ;;  %s3566_s26 = smov 8  }
 0x38b   : > { %3222 = dma.vmem_to_hbm [thread:$0]  (%p3627_p4), %s4562_s28, 2048, %s4560_s4, %s4572_s15, %s3565_s23, %s3565_s23, %s3566_s26  }
 0x38c PF: > { %p3228_p2 = scmp.ge.s32.totalorder %s3557_s17, 2  ;;  %s2603_s27 = sand.u32 1, %s3537_s12  }
 0x38d   : > { %s2604_s29 = scalar_lea.sflag [#allocation4], %s2603_s27 }
 0x38e   : > { %p3225_p3 = pnand %p3228_p2, %p3634_p8 }
 0x390   : > { %3532 = dma.done.wait (!%p3225_p3), %s2604_s29, 2048  }
 0x391   : > { %3534 = vsyncadd (!%p3225_p3), %s2604_s29, 4294965248  ;;  %s16_s17 = sadd.s32 1, %s3557_s17   ;;  %s4624_s12 = smov %s3541_s13 }
 0x392   : > { %p13_p5 = scmp.ge.s32.totalorder %s16_s17, 4   ;;  %s4625_s13 = smov %s3545_s14 }
 0x393   : > { %s4626_s14 = smov %s3640_s25  ;;  %s4627_s15 = smov %s3553_s16 }
 0x394   : > { %s4628_s16 = smov %s4630_s20  ;;  %15 = sbr.rel (!%p13_p5) target bundleno = 4 (0x4), region = 76 }
 0x39b   :  { %2609 = vsyncpa [#allocation4], 1 }
 0x39c   :  { %2611 = vsyncpa [#allocation4 + $0x1], 1 }

</bundles_post_ra>
